<compile_context>
chip_gen: v7x
topology: tpu7x:2x2x1
jax: 0.10.0
libtpu: 0.0.40
codegen_flags: <defaults>
</compile_context>

<pallas_src>
import functools

import jax
import jax.numpy as jnp
import numpy as np
from jax.experimental import pallas as pl
from jax.experimental.pallas import tpu as pltpu


# ----------------------------------------------------------------------------
# Fused encoder kernel: all layers of the bidirectional LSTM in one call.
# Ref layout (positional):
#   x_ref                      (T*B, I)   f32   time-major flattened input
#   per layer l: wih_ref       (in_l, 8H) bf16  [fwd | bwd] input->gates
#                whh_ref       (H,   8H)  bf16  [fwd | bwd] hidden->gates
#                b_ref         (1,   8H)  f32   fused b_ih+b_hh, [fwd | bwd]
#   out_ref                    (B, 2H)    f32   == ht[-2:].transpose(0,1).view
#   gx_scr                     (T*B, 8H)  f32   hoisted input projection
#   hf_scr / hb_scr            (T*B, H)   f32   de-interleaved layer output
# ----------------------------------------------------------------------------
def _encoder_kernel(*refs, seq_len, batch, hidden, num_layers):
    T, B, H = seq_len, batch, hidden
    H4, H8 = 4 * H, 8 * H

    x_ref = refs[0]
    layer_refs = [refs[1 + 3 * l: 1 + 3 * (l + 1)] for l in range(num_layers)]
    out_ref = refs[1 + 3 * num_layers]
    gx_scr, hf_scr, hb_scr = refs[2 + 3 * num_layers: 5 + 3 * num_layers]

    # Gate-lane scale, hoisted (constant): sigmoid(x) = 0.5*(tanh(x/2)+1) for
    # the i/f/o lanes, plain tanh for the g lanes -> ONE EUP push per step.
    col = jax.lax.broadcasted_iota(jnp.int32, (2 * B, H4), 1)
    gate_scale = jnp.where((col >= 2 * H) & (col < 3 * H), 1.0, 0.5
                           ).astype(jnp.float32)

    def recurrence(whh_bf, write_out):
        """Fused fwd/bwd recurrence over the precomputed gx_scr.
        State is stacked [h_f; h_b] -> (2B, H)."""
        zeros = jnp.zeros((2 * B, H), jnp.float32)
        h, c = zeros, zeros
        for t in range(T):                       # fully unrolled (T small, static)
            rt = T - 1 - t
            # One 256-wide MXU push for both directions; use diagonal blocks.
            ghh = jnp.dot(h.astype(jnp.bfloat16), whh_bf,
                          preferred_element_type=jnp.float32)        # (2B, 8H)
            gates = (jnp.concatenate([gx_scr[t * B:(t + 1) * B, 0:H4],
                                      gx_scr[rt * B:(rt + 1) * B, H4:H8]],
                                     axis=0)
                     + jnp.concatenate([ghh[0:B, 0:H4],
                                        ghh[B:2 * B, H4:H8]], axis=0))  # (2B,4H)
            th = jnp.tanh(gates * gate_scale)    # single full-tile EUP push
            i = 0.5 * (th[:, 0 * H:1 * H] + 1.0)
            f = 0.5 * (th[:, 1 * H:2 * H] + 1.0)
            g = th[:, 2 * H:3 * H]
            o = 0.5 * (th[:, 3 * H:4 * H] + 1.0)
            c = f * c + i * g
            h = o * jnp.tanh(c)
            if write_out:                        # only needed for non-final layers
                hf_scr[t * B:(t + 1) * B, :] = h[0:B]        # lane offset 0
                hb_scr[rt * B:(rt + 1) * B, :] = h[B:2 * B]  # lane offset 0
        return h

    h_last = None
    for l in range(num_layers):
        wih_ref, whh_ref, b_ref = layer_refs[l]
        if l == 0:
            # Hoisted input projection for ALL time steps, both directions.
            gx_scr[...] = (jnp.dot(x_ref[...].astype(jnp.bfloat16), wih_ref[...],
                                   preferred_element_type=jnp.float32)
                           + b_ref[...])
        else:
            # De-interleaved layer input: no (.., 2H) concat, two H-wide matmuls.
            gx_scr[...] = (jnp.dot(hf_scr[...].astype(jnp.bfloat16),
                                   wih_ref[0:H, :],
                                   preferred_element_type=jnp.float32)
                           + jnp.dot(hb_scr[...].astype(jnp.bfloat16),
                                     wih_ref[H:2 * H, :],
                                     preferred_element_type=jnp.float32)
                           + b_ref[...])
        h_last = recurrence(whh_ref[...], write_out=(l < num_layers - 1))

    # ht[-2:].transpose(0,1).contiguous().view(B, 2H)  ==  per row [h_fwd | h_bwd]
    out_ref[:, 0:H] = h_last[0:B]
    out_ref[:, H:2 * H] = h_last[B:2 * B]


# ----------------------------------------------------------------------------
# Encoder forward wrapper (single pallas_call)
# ----------------------------------------------------------------------------
def encoder_forward(x, packed):
    """x: (B, T, I) float32, batch_first like the PyTorch module.
    packed: list (per layer) of dicts with fused-layout weights
            wih (in_l, 8H) bf16, whh (H, 8H) bf16, b (1, 8H) f32."""
    B, T, I = x.shape
    batch_size = x.shape[1]          # mirrors the original `x.size()[1]` (B == T)
    num_layers = len(packed)
    H = packed[0]["whh"].shape[0]

    # time-major + flatten: row index = t*B + b (matches in-kernel slicing)
    x_flat = jnp.transpose(x, (1, 0, 2)).reshape(T * B, I)

    flat_args = [x_flat]
    for p in packed:
        flat_args += [p["wih"], p["whh"], p["b"]]

    kernel = functools.partial(_encoder_kernel, seq_len=T, batch=B,
                               hidden=H, num_layers=num_layers)

    # Advisory cost estimate (helps XLA schedule the tiny custom call).
    flops = 0
    in_sz = I
    for _ in range(num_layers):
        flops += 2 * T * B * in_sz * 8 * H           # hoisted input projection
        flops += 2 * T * (2 * B) * H * 8 * H         # per-step recurrence matmul
        in_sz = 2 * H
    transcendentals = num_layers * T * (2 * B) * 5 * H
    bytes_accessed = sum(int(np.prod(a.shape)) * a.dtype.itemsize
                         for a in flat_args) + B * 2 * H * 4

    out = pl.pallas_call(
        kernel,
        out_shape=jax.ShapeDtypeStruct((B, 2 * H), jnp.float32),
        scratch_shapes=[
            pltpu.VMEM((T * B, 8 * H), jnp.float32),   # gx: hoisted projection
            pltpu.VMEM((T * B, H), jnp.float32),       # layer output, forward
            pltpu.VMEM((T * B, H), jnp.float32),       # layer output, backward
        ],
        compiler_params=pltpu.CompilerParams(
            vmem_limit_bytes=32 * 1024 * 1024),
        cost_estimate=pl.CostEstimate(flops=flops,
                                      transcendentals=transcendentals,
                                      bytes_accessed=bytes_accessed),
    )(*flat_args)

    # Reproduce the original .view(batch_size, -1) (no-op when B == T).
    return out.reshape(batch_size, -1)


# ----------------------------------------------------------------------------
# Pure-JAX f32 reference (lax.scan) for a correctness check
# ----------------------------------------------------------------------------
def _lstm_direction_ref(x_tbi, w_ih, w_hh, bias):
    H = w_hh.shape[0]

    def step(carry, x_t):
        h, c = carry
        gates = x_t @ w_ih + h @ w_hh + bias
        i = jax.nn.sigmoid(gates[:, 0 * H:1 * H])
        f = jax.nn.sigmoid(gates[:, 1 * H:2 * H])
        g = jnp.tanh(gates[:, 2 * H:3 * H])
        o = jax.nn.sigmoid(gates[:, 3 * H:4 * H])
        c = f * c + i * g
        h = o * jnp.tanh(c)
        return (h, c), h

    B = x_tbi.shape[1]
    init = (jnp.zeros((B, H), jnp.float32), jnp.zeros((B, H), jnp.float32))
    _, hs = jax.lax.scan(step, init, x_tbi)
    return hs


def encoder_forward_ref(x, params):
    batch_size = x.shape[1]
    layer_in = jnp.transpose(x, (1, 0, 2))
    h_f_final = h_b_final = None
    for p in params:
        out_f = _lstm_direction_ref(layer_in, p["wih_f"], p["whh_f"], p["b_f"])
        out_b_rev = _lstm_direction_ref(
            jnp.flip(layer_in, axis=0), p["wih_b"], p["whh_b"], p["b_b"])
        h_f_final, h_b_final = out_f[-1], out_b_rev[-1]
        layer_in = jnp.concatenate([out_f, jnp.flip(out_b_rev, 0)], axis=-1)
    ht_last2 = jnp.stack([h_f_final, h_b_final], axis=0)
    return jnp.transpose(ht_last2, (1, 0, 2)).reshape(batch_size, -1)


# ----------------------------------------------------------------------------
# Parameter init (PyTorch-like uniform(-1/sqrt(H), 1/sqrt(H))) and packing
# into the fused 8H-wide bf16 layout consumed by the kernel.
# ----------------------------------------------------------------------------
def init_params(key, input_size, hidden, num_layers):
    bound = 1.0 / np.sqrt(hidden)
    params = []
    for layer in range(num_layers):
        in_sz = input_size if layer == 0 else 2 * hidden
        layer_p = {}
        for d in ("f", "b"):
            key, k1, k2, k3, k4 = jax.random.split(key, 5)
            layer_p[f"wih_{d}"] = jax.random.uniform(
                k1, (in_sz, 4 * hidden), jnp.float32, -bound, bound)
            layer_p[f"whh_{d}"] = jax.random.uniform(
                k2, (hidden, 4 * hidden), jnp.float32, -bound, bound)
            b_ih = jax.random.uniform(k3, (4 * hidden,), jnp.float32, -bound, bound)
            b_hh = jax.random.uniform(k4, (4 * hidden,), jnp.float32, -bound, bound)
            layer_p[f"b_{d}"] = (b_ih + b_hh).reshape(1, 4 * hidden)
        params.append(layer_p)
    return params


def pack_params(params):
    """One-time weight-layout conversion: concat fwd|bwd to 8H wide, bf16 for
    the MXU operands (biases stay f32, added post-matmul)."""
    packed = []
    for p in params:
        packed.append({
            "wih": jnp.concatenate([p["wih_f"], p["wih_b"]], axis=1
                                   ).astype(jnp.bfloat16),
            "whh": jnp.concatenate([p["whh_f"], p["whh_b"]], axis=1
                                   ).astype(jnp.bfloat16),
            "b":   jnp.concatenate([p["b_f"], p["b_b"]], axis=1),
        })
    return packed


if __name__ == "__main__":
    # config: lstm_input=16, lstm_hidden=32, lstm_layer=2,
    #         lstm_dropout=0.0, lstm_bi=True
    B, T, I, H, L = 8, 8, 16, 32, 2   # B == T (see note about x.size()[1])

    key = jax.random.PRNGKey(0)
    kx, kp = jax.random.split(key)
    x = jax.random.normal(kx, (B, T, I), jnp.float32)
    params = init_params(kp, I, H, L)
    packed = pack_params(params)

    encoder_jit = jax.jit(encoder_forward)
    out = jax.block_until_ready(encoder_jit(x, packed))
    ref = jax.block_until_ready(encoder_forward_ref(x, params))

    assert out.shape == (B, 2 * H), out.shape
    # bf16 MXU operands deviate from the f32 reference by a few e-3 at H=32.
    max_err = float(jnp.max(jnp.abs(out - ref)))
    assert np.allclose(np.asarray(out), np.asarray(ref),
                       atol=1e-2, rtol=1e-2), f"max abs err = {max_err}"
    print("KERNEL_OK")
</pallas_src>

<mosaic_0001>
module attributes {stable_mosaic.version = 11 : i64} {
  func.func @_encoder_kernel(%arg0: memref<64x16xf32, #tpu.memory_space<vmem>>, %arg1: memref<16x256xbf16, #tpu.memory_space<vmem>>, %arg2: memref<32x256xbf16, #tpu.memory_space<vmem>>, %arg3: memref<1x256xf32, #tpu.memory_space<vmem>>, %arg4: memref<64x256xbf16, #tpu.memory_space<vmem>>, %arg5: memref<32x256xbf16, #tpu.memory_space<vmem>>, %arg6: memref<1x256xf32, #tpu.memory_space<vmem>>, %arg7: memref<8x64xf32, #tpu.memory_space<vmem>>, %arg8: memref<64x256xf32, #tpu.memory_space<vmem>>, %arg9: memref<64x32xf32, #tpu.memory_space<vmem>>, %arg10: memref<64x32xf32, #tpu.memory_space<vmem>>) attributes {dimension_semantics = [], scalar_prefetch = 0 : i64, scratch_operands = 3 : i64, tpu.core_type = #tpu.core_type<tc>} {
    %0 = tpu.iota {dimensions = array<i32: 1>} : vector<16x128xi32>
    %c64_i32 = arith.constant 64 : i32
    %1 = vector.broadcast %c64_i32 : i32 to vector<16x128xi32>
    %2 = arith.cmpi sge, %0, %1 : vector<16x128xi32>
    %c96_i32 = arith.constant 96 : i32
    %3 = vector.broadcast %c96_i32 : i32 to vector<16x128xi32>
    %4 = arith.cmpi slt, %0, %3 : vector<16x128xi32>
    %5 = arith.andi %2, %4 : vector<16x128xi1>
    %cst = arith.constant 1.000000e+00 : f32
    %cst_0 = arith.constant 5.000000e-01 : f32
    %6 = vector.broadcast %cst : f32 to vector<16x128xf32>
    %7 = vector.broadcast %cst_0 : f32 to vector<16x128xf32>
    %8 = arith.select %5, %6, %7 : vector<16x128xi1>, vector<16x128xf32>
    %c0 = arith.constant 0 : index
    %c0_1 = arith.constant 0 : index
    %9 = vector.load %arg0[%c0, %c0_1] : memref<64x16xf32, #tpu.memory_space<vmem>>, vector<64x16xf32>
    %10 = arith.truncf %9 : vector<64x16xf32> to vector<64x16xbf16>
    %c0_2 = arith.constant 0 : index
    %c0_3 = arith.constant 0 : index
    %11 = vector.load %arg1[%c0_2, %c0_3] : memref<16x256xbf16, #tpu.memory_space<vmem>>, vector<16x256xbf16>
    %cst_4 = arith.constant dense<0.000000e+00> : vector<64x256xf32>
    %12 = tpu.matmul %10, %11, %cst_4 {dimension_numbers = #tpu.dot_dimension_numbers<[1], [0], [0], [1], [0, 0, 1, 1], [], []>} : vector<64x16xbf16>, vector<16x256xbf16>, vector<64x256xf32> -> vector<64x256xf32>
    %c0_5 = arith.constant 0 : index
    %c0_6 = arith.constant 0 : index
    %13 = vector.load %arg3[%c0_5, %c0_6] : memref<1x256xf32, #tpu.memory_space<vmem>>, vector<1x256xf32>
    %14 = vector.broadcast %13 : vector<1x256xf32> to vector<64x256xf32>
    %15 = arith.addf %12, %14 : vector<64x256xf32>
    %c0_7 = arith.constant 0 : index
    %c0_8 = arith.constant 0 : index
    %16 = vector.load %arg8[%c0_7, %c0_8] : memref<64x256xf32, #tpu.memory_space<vmem>>, vector<64x256xf32>
    tpu.vector_store %arg8[%c0_7, %c0_8], %15 {strides = array<i32>} : memref<64x256xf32, #tpu.memory_space<vmem>>, vector<64x256xf32>,
    %c0_9 = arith.constant 0 : index
    %c0_10 = arith.constant 0 : index
    %17 = vector.load %arg2[%c0_9, %c0_10] : memref<32x256xbf16, #tpu.memory_space<vmem>>, vector<32x256xbf16>
    %cst_11 = arith.constant 0.000000e+00 : f32
    %18 = vector.broadcast %cst_11 : f32 to vector<16x32xf32>
    %19 = arith.truncf %18 : vector<16x32xf32> to vector<16x32xbf16>
    %cst_12 = arith.constant dense<0.000000e+00> : vector<16x256xf32>
    %20 = tpu.matmul %19, %17, %cst_12 {dimension_numbers = #tpu.dot_dimension_numbers<[1], [0], [0], [1], [0, 0, 1, 1], [], []>} : vector<16x32xbf16>, vector<32x256xbf16>, vector<16x256xf32> -> vector<16x256xf32>
    %c0_13 = arith.constant 0 : index
    %c0_14 = arith.constant 0 : index
    %21 = vector.load %arg8[%c0_13, %c0_14] : memref<64x256xf32, #tpu.memory_space<vmem>>, vector<8x128xf32>
    %c56 = arith.constant 56 : index
    %c128 = arith.constant 128 : index
    %22 = vector.load %arg8[%c56, %c128] : memref<64x256xf32, #tpu.memory_space<vmem>>, vector<8x128xf32>
    %23 = tpu.concatenate %21, %22 in 0 : vector<8x128xf32>, vector<8x128xf32> -> vector<16x128xf32>
    %24 = vector.extract_strided_slice %20 {offsets = [0, 0], sizes = [8, 128], strides = [1, 1]} : vector<16x256xf32> to vector<8x128xf32>
    %25 = vector.extract_strided_slice %20 {offsets = [8, 128], sizes = [8, 128], strides = [1, 1]} : vector<16x256xf32> to vector<8x128xf32>
    %26 = tpu.concatenate %24, %25 in 0 : vector<8x128xf32>, vector<8x128xf32> -> vector<16x128xf32>
    %27 = arith.addf %23, %26 : vector<16x128xf32>
    %28 = arith.mulf %27, %8 : vector<16x128xf32>
    %29 = math.tanh %28 : vector<16x128xf32>
    %30 = vector.extract_strided_slice %29 {offsets = [0, 0], sizes = [16, 32], strides = [1, 1]} : vector<16x128xf32> to vector<16x32xf32>
    %cst_15 = arith.constant 1.000000e+00 : f32
    %31 = vector.broadcast %cst_15 : f32 to vector<16x32xf32>
    %32 = arith.addf %30, %31 : vector<16x32xf32>
    %cst_16 = arith.constant 5.000000e-01 : f32
    %33 = vector.broadcast %cst_16 : f32 to vector<16x32xf32>
    %34 = arith.mulf %33, %32 : vector<16x32xf32>
    %35 = vector.extract_strided_slice %29 {offsets = [0, 32], sizes = [16, 32], strides = [1, 1]} : vector<16x128xf32> to vector<16x32xf32>
    %cst_17 = arith.constant 1.000000e+00 : f32
    %36 = vector.broadcast %cst_17 : f32 to vector<16x32xf32>
    %37 = arith.addf %35, %36 : vector<16x32xf32>
    %cst_18 = arith.constant 5.000000e-01 : f32
    %38 = vector.broadcast %cst_18 : f32 to vector<16x32xf32>
    %39 = arith.mulf %38, %37 : vector<16x32xf32>
    %40 = vector.extract_strided_slice %29 {offsets = [0, 64], sizes = [16, 32], strides = [1, 1]} : vector<16x128xf32> to vector<16x32xf32>
    %41 = vector.extract_strided_slice %29 {offsets = [0, 96], sizes = [16, 32], strides = [1, 1]} : vector<16x128xf32> to vector<16x32xf32>
    %cst_19 = arith.constant 1.000000e+00 : f32
    %42 = vector.broadcast %cst_19 : f32 to vector<16x32xf32>
    %43 = arith.addf %41, %42 : vector<16x32xf32>
    %cst_20 = arith.constant 5.000000e-01 : f32
    %44 = vector.broadcast %cst_20 : f32 to vector<16x32xf32>
    %45 = arith.mulf %44, %43 : vector<16x32xf32>
    %46 = arith.mulf %39, %18 : vector<16x32xf32>
    %47 = arith.mulf %34, %40 : vector<16x32xf32>
    %48 = arith.addf %46, %47 : vector<16x32xf32>
    %49 = math.tanh %48 : vector<16x32xf32>
    %50 = arith.mulf %45, %49 : vector<16x32xf32>
    %51 = vector.extract_strided_slice %50 {offsets = [0, 0], sizes = [8, 32], strides = [1, 1]} : vector<16x32xf32> to vector<8x32xf32>
    %c0_21 = arith.constant 0 : index
    %c0_22 = arith.constant 0 : index
    %52 = vector.load %arg9[%c0_21, %c0_22] : memref<64x32xf32, #tpu.memory_space<vmem>>, vector<8x32xf32>
    tpu.vector_store %arg9[%c0_21, %c0_22], %51 {strides = array<i32>} : memref<64x32xf32, #tpu.memory_space<vmem>>, vector<8x32xf32>,
    %53 = vector.extract_strided_slice %50 {offsets = [8, 0], sizes = [8, 32], strides = [1, 1]} : vector<16x32xf32> to vector<8x32xf32>
    %c56_23 = arith.constant 56 : index
    %c0_24 = arith.constant 0 : index
    %54 = vector.load %arg10[%c56_23, %c0_24] : memref<64x32xf32, #tpu.memory_space<vmem>>, vector<8x32xf32>
    tpu.vector_store %arg10[%c56_23, %c0_24], %53 {strides = array<i32>} : memref<64x32xf32, #tpu.memory_space<vmem>>, vector<8x32xf32>,
    %55 = arith.truncf %50 : vector<16x32xf32> to vector<16x32xbf16>
    %cst_25 = arith.constant dense<0.000000e+00> : vector<16x256xf32>
    %56 = tpu.matmul %55, %17, %cst_25 {dimension_numbers = #tpu.dot_dimension_numbers<[1], [0], [0], [1], [0, 0, 1, 1], [], []>} : vector<16x32xbf16>, vector<32x256xbf16>, vector<16x256xf32> -> vector<16x256xf32>
    %c8 = arith.constant 8 : index
    %c0_26 = arith.constant 0 : index
    %57 = vector.load %arg8[%c8, %c0_26] : memref<64x256xf32, #tpu.memory_space<vmem>>, vector<8x128xf32>
    %c48 = arith.constant 48 : index
    %c128_27 = arith.constant 128 : index
    %58 = vector.load %arg8[%c48, %c128_27] : memref<64x256xf32, #tpu.memory_space<vmem>>, vector<8x128xf32>
    %59 = tpu.concatenate %57, %58 in 0 : vector<8x128xf32>, vector<8x128xf32> -> vector<16x128xf32>
    %60 = vector.extract_strided_slice %56 {offsets = [0, 0], sizes = [8, 128], strides = [1, 1]} : vector<16x256xf32> to vector<8x128xf32>
    %61 = vector.extract_strided_slice %56 {offsets = [8, 128], sizes = [8, 128], strides = [1, 1]} : vector<16x256xf32> to vector<8x128xf32>
    %62 = tpu.concatenate %60, %61 in 0 : vector<8x128xf32>, vector<8x128xf32> -> vector<16x128xf32>
    %63 = arith.addf %59, %62 : vector<16x128xf32>
    %64 = arith.mulf %63, %8 : vector<16x128xf32>
    %65 = math.tanh %64 : vector<16x128xf32>
    %66 = vector.extract_strided_slice %65 {offsets = [0, 0], sizes = [16, 32], strides = [1, 1]} : vector<16x128xf32> to vector<16x32xf32>
    %cst_28 = arith.constant 1.000000e+00 : f32
    %67 = vector.broadcast %cst_28 : f32 to vector<16x32xf32>
    %68 = arith.addf %66, %67 : vector<16x32xf32>
    %cst_29 = arith.constant 5.000000e-01 : f32
    %69 = vector.broadcast %cst_29 : f32 to vector<16x32xf32>
    %70 = arith.mulf %69, %68 : vector<16x32xf32>
    %71 = vector.extract_strided_slice %65 {offsets = [0, 32], sizes = [16, 32], strides = [1, 1]} : vector<16x128xf32> to vector<16x32xf32>
    %cst_30 = arith.constant 1.000000e+00 : f32
    %72 = vector.broadcast %cst_30 : f32 to vector<16x32xf32>
    %73 = arith.addf %71, %72 : vector<16x32xf32>
    %cst_31 = arith.constant 5.000000e-01 : f32
    %74 = vector.broadcast %cst_31 : f32 to vector<16x32xf32>
    %75 = arith.mulf %74, %73 : vector<16x32xf32>
    %76 = vector.extract_strided_slice %65 {offsets = [0, 64], sizes = [16, 32], strides = [1, 1]} : vector<16x128xf32> to vector<16x32xf32>
    %77 = vector.extract_strided_slice %65 {offsets = [0, 96], sizes = [16, 32], strides = [1, 1]} : vector<16x128xf32> to vector<16x32xf32>
    %cst_32 = arith.constant 1.000000e+00 : f32
    %78 = vector.broadcast %cst_32 : f32 to vector<16x32xf32>
    %79 = arith.addf %77, %78 : vector<16x32xf32>
    %cst_33 = arith.constant 5.000000e-01 : f32
    %80 = vector.broadcast %cst_33 : f32 to vector<16x32xf32>
    %81 = arith.mulf %80, %79 : vector<16x32xf32>
    %82 = arith.mulf %75, %48 : vector<16x32xf32>
    %83 = arith.mulf %70, %76 : vector<16x32xf32>
    %84 = arith.addf %82, %83 : vector<16x32xf32>
    %85 = math.tanh %84 : vector<16x32xf32>
    %86 = arith.mulf %81, %85 : vector<16x32xf32>
    %87 = vector.extract_strided_slice %86 {offsets = [0, 0], sizes = [8, 32], strides = [1, 1]} : vector<16x32xf32> to vector<8x32xf32>
    %c8_34 = arith.constant 8 : index
    %c0_35 = arith.constant 0 : index
    %88 = vector.load %arg9[%c8_34, %c0_35] : memref<64x32xf32, #tpu.memory_space<vmem>>, vector<8x32xf32>
    tpu.vector_store %arg9[%c8_34, %c0_35], %87 {strides = array<i32>} : memref<64x32xf32, #tpu.memory_space<vmem>>, vector<8x32xf32>,
    %89 = vector.extract_strided_slice %86 {offsets = [8, 0], sizes = [8, 32], strides = [1, 1]} : vector<16x32xf32> to vector<8x32xf32>
    %c48_36 = arith.constant 48 : index
    %c0_37 = arith.constant 0 : index
    %90 = vector.load %arg10[%c48_36, %c0_37] : memref<64x32xf32, #tpu.memory_space<vmem>>, vector<8x32xf32>
    tpu.vector_store %arg10[%c48_36, %c0_37], %89 {strides = array<i32>} : memref<64x32xf32, #tpu.memory_space<vmem>>, vector<8x32xf32>,
    %91 = arith.truncf %86 : vector<16x32xf32> to vector<16x32xbf16>
    %cst_38 = arith.constant dense<0.000000e+00> : vector<16x256xf32>
    %92 = tpu.matmul %91, %17, %cst_38 {dimension_numbers = #tpu.dot_dimension_numbers<[1], [0], [0], [1], [0, 0, 1, 1], [], []>} : vector<16x32xbf16>, vector<32x256xbf16>, vector<16x256xf32> -> vector<16x256xf32>
    %c16 = arith.constant 16 : index
    %c0_39 = arith.constant 0 : index
    %93 = vector.load %arg8[%c16, %c0_39] : memref<64x256xf32, #tpu.memory_space<vmem>>, vector<8x128xf32>
    %c40 = arith.constant 40 : index
    %c128_40 = arith.constant 128 : index
    %94 = vector.load %arg8[%c40, %c128_40] : memref<64x256xf32, #tpu.memory_space<vmem>>, vector<8x128xf32>
    %95 = tpu.concatenate %93, %94 in 0 : vector<8x128xf32>, vector<8x128xf32> -> vector<16x128xf32>
    %96 = vector.extract_strided_slice %92 {offsets = [0, 0], sizes = [8, 128], strides = [1, 1]} : vector<16x256xf32> to vector<8x128xf32>
    %97 = vector.extract_strided_slice %92 {offsets = [8, 128], sizes = [8, 128], strides = [1, 1]} : vector<16x256xf32> to vector<8x128xf32>
    %98 = tpu.concatenate %96, %97 in 0 : vector<8x128xf32>, vector<8x128xf32> -> vector<16x128xf32>
    %99 = arith.addf %95, %98 : vector<16x128xf32>
    %100 = arith.mulf %99, %8 : vector<16x128xf32>
    %101 = math.tanh %100 : vector<16x128xf32>
    %102 = vector.extract_strided_slice %101 {offsets = [0, 0], sizes = [16, 32], strides = [1, 1]} : vector<16x128xf32> to vector<16x32xf32>
    %cst_41 = arith.constant 1.000000e+00 : f32
    %103 = vector.broadcast %cst_41 : f32 to vector<16x32xf32>
    %104 = arith.addf %102, %103 : vector<16x32xf32>
    %cst_42 = arith.constant 5.000000e-01 : f32
    %105 = vector.broadcast %cst_42 : f32 to vector<16x32xf32>
    %106 = arith.mulf %105, %104 : vector<16x32xf32>
    %107 = vector.extract_strided_slice %101 {offsets = [0, 32], sizes = [16, 32], strides = [1, 1]} : vector<16x128xf32> to vector<16x32xf32>
    %cst_43 = arith.constant 1.000000e+00 : f32
    %108 = vector.broadcast %cst_43 : f32 to vector<16x32xf32>
    %109 = arith.addf %107, %108 : vector<16x32xf32>
    %cst_44 = arith.constant 5.000000e-01 : f32
    %110 = vector.broadcast %cst_44 : f32 to vector<16x32xf32>
    %111 = arith.mulf %110, %109 : vector<16x32xf32>
    %112 = vector.extract_strided_slice %101 {offsets = [0, 64], sizes = [16, 32], strides = [1, 1]} : vector<16x128xf32> to vector<16x32xf32>
    %113 = vector.extract_strided_slice %101 {offsets = [0, 96], sizes = [16, 32], strides = [1, 1]} : vector<16x128xf32> to vector<16x32xf32>
    %cst_45 = arith.constant 1.000000e+00 : f32
    %114 = vector.broadcast %cst_45 : f32 to vector<16x32xf32>
    %115 = arith.addf %113, %114 : vector<16x32xf32>
    %cst_46 = arith.constant 5.000000e-01 : f32
    %116 = vector.broadcast %cst_46 : f32 to vector<16x32xf32>
    %117 = arith.mulf %116, %115 : vector<16x32xf32>
    %118 = arith.mulf %111, %84 : vector<16x32xf32>
    %119 = arith.mulf %106, %112 : vector<16x32xf32>
    %120 = arith.addf %118, %119 : vector<16x32xf32>
    %121 = math.tanh %120 : vector<16x32xf32>
    %122 = arith.mulf %117, %121 : vector<16x32xf32>
    %123 = vector.extract_strided_slice %122 {offsets = [0, 0], sizes = [8, 32], strides = [1, 1]} : vector<16x32xf32> to vector<8x32xf32>
    %c16_47 = arith.constant 16 : index
    %c0_48 = arith.constant 0 : index
    %124 = vector.load %arg9[%c16_47, %c0_48] : memref<64x32xf32, #tpu.memory_space<vmem>>, vector<8x32xf32>
    tpu.vector_store %arg9[%c16_47, %c0_48], %123 {strides = array<i32>} : memref<64x32xf32, #tpu.memory_space<vmem>>, vector<8x32xf32>,
    %125 = vector.extract_strided_slice %122 {offsets = [8, 0], sizes = [8, 32], strides = [1, 1]} : vector<16x32xf32> to vector<8x32xf32>
    %c40_49 = arith.constant 40 : index
    %c0_50 = arith.constant 0 : index
    %126 = vector.load %arg10[%c40_49, %c0_50] : memref<64x32xf32, #tpu.memory_space<vmem>>, vector<8x32xf32>
    tpu.vector_store %arg10[%c40_49, %c0_50], %125 {strides = array<i32>} : memref<64x32xf32, #tpu.memory_space<vmem>>, vector<8x32xf32>,
    %127 = arith.truncf %122 : vector<16x32xf32> to vector<16x32xbf16>
    %cst_51 = arith.constant dense<0.000000e+00> : vector<16x256xf32>
    %128 = tpu.matmul %127, %17, %cst_51 {dimension_numbers = #tpu.dot_dimension_numbers<[1], [0], [0], [1], [0, 0, 1, 1], [], []>} : vector<16x32xbf16>, vector<32x256xbf16>, vector<16x256xf32> -> vector<16x256xf32>
    %c24 = arith.constant 24 : index
    %c0_52 = arith.constant 0 : index
    %129 = vector.load %arg8[%c24, %c0_52] : memref<64x256xf32, #tpu.memory_space<vmem>>, vector<8x128xf32>
    %c32 = arith.constant 32 : index
    %c128_53 = arith.constant 128 : index
    %130 = vector.load %arg8[%c32, %c128_53] : memref<64x256xf32, #tpu.memory_space<vmem>>, vector<8x128xf32>
    %131 = tpu.concatenate %129, %130 in 0 : vector<8x128xf32>, vector<8x128xf32> -> vector<16x128xf32>
    %132 = vector.extract_strided_slice %128 {offsets = [0, 0], sizes = [8, 128], strides = [1, 1]} : vector<16x256xf32> to vector<8x128xf32>
    %133 = vector.extract_strided_slice %128 {offsets = [8, 128], sizes = [8, 128], strides = [1, 1]} : vector<16x256xf32> to vector<8x128xf32>
    %134 = tpu.concatenate %132, %133 in 0 : vector<8x128xf32>, vector<8x128xf32> -> vector<16x128xf32>
    %135 = arith.addf %131, %134 : vector<16x128xf32>
    %136 = arith.mulf %135, %8 : vector<16x128xf32>
    %137 = math.tanh %136 : vector<16x128xf32>
    %138 = vector.extract_strided_slice %137 {offsets = [0, 0], sizes = [16, 32], strides = [1, 1]} : vector<16x128xf32> to vector<16x32xf32>
    %cst_54 = arith.constant 1.000000e+00 : f32
    %139 = vector.broadcast %cst_54 : f32 to vector<16x32xf32>
    %140 = arith.addf %138, %139 : vector<16x32xf32>
    %cst_55 = arith.constant 5.000000e-01 : f32
    %141 = vector.broadcast %cst_55 : f32 to vector<16x32xf32>
    %142 = arith.mulf %141, %140 : vector<16x32xf32>
    %143 = vector.extract_strided_slice %137 {offsets = [0, 32], sizes = [16, 32], strides = [1, 1]} : vector<16x128xf32> to vector<16x32xf32>
    %cst_56 = arith.constant 1.000000e+00 : f32
    %144 = vector.broadcast %cst_56 : f32 to vector<16x32xf32>
    %145 = arith.addf %143, %144 : vector<16x32xf32>
    %cst_57 = arith.constant 5.000000e-01 : f32
    %146 = vector.broadcast %cst_57 : f32 to vector<16x32xf32>
    %147 = arith.mulf %146, %145 : vector<16x32xf32>
    %148 = vector.extract_strided_slice %137 {offsets = [0, 64], sizes = [16, 32], strides = [1, 1]} : vector<16x128xf32> to vector<16x32xf32>
    %149 = vector.extract_strided_slice %137 {offsets = [0, 96], sizes = [16, 32], strides = [1, 1]} : vector<16x128xf32> to vector<16x32xf32>
    %cst_58 = arith.constant 1.000000e+00 : f32
    %150 = vector.broadcast %cst_58 : f32 to vector<16x32xf32>
    %151 = arith.addf %149, %150 : vector<16x32xf32>
    %cst_59 = arith.constant 5.000000e-01 : f32
    %152 = vector.broadcast %cst_59 : f32 to vector<16x32xf32>
    %153 = arith.mulf %152, %151 : vector<16x32xf32>
    %154 = arith.mulf %147, %120 : vector<16x32xf32>
    %155 = arith.mulf %142, %148 : vector<16x32xf32>
    %156 = arith.addf %154, %155 : vector<16x32xf32>
    %157 = math.tanh %156 : vector<16x32xf32>
    %158 = arith.mulf %153, %157 : vector<16x32xf32>
    %159 = vector.extract_strided_slice %158 {offsets = [0, 0], sizes = [8, 32], strides = [1, 1]} : vector<16x32xf32> to vector<8x32xf32>
    %c24_60 = arith.constant 24 : index
    %c0_61 = arith.constant 0 : index
    %160 = vector.load %arg9[%c24_60, %c0_61] : memref<64x32xf32, #tpu.memory_space<vmem>>, vector<8x32xf32>
    tpu.vector_store %arg9[%c24_60, %c0_61], %159 {strides = array<i32>} : memref<64x32xf32, #tpu.memory_space<vmem>>, vector<8x32xf32>,
    %161 = vector.extract_strided_slice %158 {offsets = [8, 0], sizes = [8, 32], strides = [1, 1]} : vector<16x32xf32> to vector<8x32xf32>
    %c32_62 = arith.constant 32 : index
    %c0_63 = arith.constant 0 : index
    %162 = vector.load %arg10[%c32_62, %c0_63] : memref<64x32xf32, #tpu.memory_space<vmem>>, vector<8x32xf32>
    tpu.vector_store %arg10[%c32_62, %c0_63], %161 {strides = array<i32>} : memref<64x32xf32, #tpu.memory_space<vmem>>, vector<8x32xf32>,
    %163 = arith.truncf %158 : vector<16x32xf32> to vector<16x32xbf16>
    %cst_64 = arith.constant dense<0.000000e+00> : vector<16x256xf32>
    %164 = tpu.matmul %163, %17, %cst_64 {dimension_numbers = #tpu.dot_dimension_numbers<[1], [0], [0], [1], [0, 0, 1, 1], [], []>} : vector<16x32xbf16>, vector<32x256xbf16>, vector<16x256xf32> -> vector<16x256xf32>
    %c32_65 = arith.constant 32 : index
    %c0_66 = arith.constant 0 : index
    %165 = vector.load %arg8[%c32_65, %c0_66] : memref<64x256xf32, #tpu.memory_space<vmem>>, vector<8x128xf32>
    %c24_67 = arith.constant 24 : index
    %c128_68 = arith.constant 128 : index
    %166 = vector.load %arg8[%c24_67, %c128_68] : memref<64x256xf32, #tpu.memory_space<vmem>>, vector<8x128xf32>
    %167 = tpu.concatenate %165, %166 in 0 : vector<8x128xf32>, vector<8x128xf32> -> vector<16x128xf32>
    %168 = vector.extract_strided_slice %164 {offsets = [0, 0], sizes = [8, 128], strides = [1, 1]} : vector<16x256xf32> to vector<8x128xf32>
    %169 = vector.extract_strided_slice %164 {offsets = [8, 128], sizes = [8, 128], strides = [1, 1]} : vector<16x256xf32> to vector<8x128xf32>
    %170 = tpu.concatenate %168, %169 in 0 : vector<8x128xf32>, vector<8x128xf32> -> vector<16x128xf32>
    %171 = arith.addf %167, %170 : vector<16x128xf32>
    %172 = arith.mulf %171, %8 : vector<16x128xf32>
    %173 = math.tanh %172 : vector<16x128xf32>
    %174 = vector.extract_strided_slice %173 {offsets = [0, 0], sizes = [16, 32], strides = [1, 1]} : vector<16x128xf32> to vector<16x32xf32>
    %cst_69 = arith.constant 1.000000e+00 : f32
    %175 = vector.broadcast %cst_69 : f32 to vector<16x32xf32>
    %176 = arith.addf %174, %175 : vector<16x32xf32>
    %cst_70 = arith.constant 5.000000e-01 : f32
    %177 = vector.broadcast %cst_70 : f32 to vector<16x32xf32>
    %178 = arith.mulf %177, %176 : vector<16x32xf32>
    %179 = vector.extract_strided_slice %173 {offsets = [0, 32], sizes = [16, 32], strides = [1, 1]} : vector<16x128xf32> to vector<16x32xf32>
    %cst_71 = arith.constant 1.000000e+00 : f32
    %180 = vector.broadcast %cst_71 : f32 to vector<16x32xf32>
    %181 = arith.addf %179, %180 : vector<16x32xf32>
    %cst_72 = arith.constant 5.000000e-01 : f32
    %182 = vector.broadcast %cst_72 : f32 to vector<16x32xf32>
    %183 = arith.mulf %182, %181 : vector<16x32xf32>
    %184 = vector.extract_strided_slice %173 {offsets = [0, 64], sizes = [16, 32], strides = [1, 1]} : vector<16x128xf32> to vector<16x32xf32>
    %185 = vector.extract_strided_slice %173 {offsets = [0, 96], sizes = [16, 32], strides = [1, 1]} : vector<16x128xf32> to vector<16x32xf32>
    %cst_73 = arith.constant 1.000000e+00 : f32
    %186 = vector.broadcast %cst_73 : f32 to vector<16x32xf32>
    %187 = arith.addf %185, %186 : vector<16x32xf32>
    %cst_74 = arith.constant 5.000000e-01 : f32
    %188 = vector.broadcast %cst_74 : f32 to vector<16x32xf32>
    %189 = arith.mulf %188, %187 : vector<16x32xf32>
    %190 = arith.mulf %183, %156 : vector<16x32xf32>
    %191 = arith.mulf %178, %184 : vector<16x32xf32>
    %192 = arith.addf %190, %191 : vector<16x32xf32>
    %193 = math.tanh %192 : vector<16x32xf32>
    %194 = arith.mulf %189, %193 : vector<16x32xf32>
    %195 = vector.extract_strided_slice %194 {offsets = [0, 0], sizes = [8, 32], strides = [1, 1]} : vector<16x32xf32> to vector<8x32xf32>
    %c32_75 = arith.constant 32 : index
    %c0_76 = arith.constant 0 : index
    %196 = vector.load %arg9[%c32_75, %c0_76] : memref<64x32xf32, #tpu.memory_space<vmem>>, vector<8x32xf32>
    tpu.vector_store %arg9[%c32_75, %c0_76], %195 {strides = array<i32>} : memref<64x32xf32, #tpu.memory_space<vmem>>, vector<8x32xf32>,
    %197 = vector.extract_strided_slice %194 {offsets = [8, 0], sizes = [8, 32], strides = [1, 1]} : vector<16x32xf32> to vector<8x32xf32>
    %c24_77 = arith.constant 24 : index
    %c0_78 = arith.constant 0 : index
    %198 = vector.load %arg10[%c24_77, %c0_78] : memref<64x32xf32, #tpu.memory_space<vmem>>, vector<8x32xf32>
    tpu.vector_store %arg10[%c24_77, %c0_78], %197 {strides = array<i32>} : memref<64x32xf32, #tpu.memory_space<vmem>>, vector<8x32xf32>,
    %199 = arith.truncf %194 : vector<16x32xf32> to vector<16x32xbf16>
    %cst_79 = arith.constant dense<0.000000e+00> : vector<16x256xf32>
    %200 = tpu.matmul %199, %17, %cst_79 {dimension_numbers = #tpu.dot_dimension_numbers<[1], [0], [0], [1], [0, 0, 1, 1], [], []>} : vector<16x32xbf16>, vector<32x256xbf16>, vector<16x256xf32> -> vector<16x256xf32>
    %c40_80 = arith.constant 40 : index
    %c0_81 = arith.constant 0 : index
    %201 = vector.load %arg8[%c40_80, %c0_81] : memref<64x256xf32, #tpu.memory_space<vmem>>, vector<8x128xf32>
    %c16_82 = arith.constant 16 : index
    %c128_83 = arith.constant 128 : index
    %202 = vector.load %arg8[%c16_82, %c128_83] : memref<64x256xf32, #tpu.memory_space<vmem>>, vector<8x128xf32>
    %203 = tpu.concatenate %201, %202 in 0 : vector<8x128xf32>, vector<8x128xf32> -> vector<16x128xf32>
    %204 = vector.extract_strided_slice %200 {offsets = [0, 0], sizes = [8, 128], strides = [1, 1]} : vector<16x256xf32> to vector<8x128xf32>
    %205 = vector.extract_strided_slice %200 {offsets = [8, 128], sizes = [8, 128], strides = [1, 1]} : vector<16x256xf32> to vector<8x128xf32>
    %206 = tpu.concatenate %204, %205 in 0 : vector<8x128xf32>, vector<8x128xf32> -> vector<16x128xf32>
    %207 = arith.addf %203, %206 : vector<16x128xf32>
    %208 = arith.mulf %207, %8 : vector<16x128xf32>
    %209 = math.tanh %208 : vector<16x128xf32>
    %210 = vector.extract_strided_slice %209 {offsets = [0, 0], sizes = [16, 32], strides = [1, 1]} : vector<16x128xf32> to vector<16x32xf32>
    %cst_84 = arith.constant 1.000000e+00 : f32
    %211 = vector.broadcast %cst_84 : f32 to vector<16x32xf32>
    %212 = arith.addf %210, %211 : vector<16x32xf32>
    %cst_85 = arith.constant 5.000000e-01 : f32
    %213 = vector.broadcast %cst_85 : f32 to vector<16x32xf32>
    %214 = arith.mulf %213, %212 : vector<16x32xf32>
    %215 = vector.extract_strided_slice %209 {offsets = [0, 32], sizes = [16, 32], strides = [1, 1]} : vector<16x128xf32> to vector<16x32xf32>
    %cst_86 = arith.constant 1.000000e+00 : f32
    %216 = vector.broadcast %cst_86 : f32 to vector<16x32xf32>
    %217 = arith.addf %215, %216 : vector<16x32xf32>
    %cst_87 = arith.constant 5.000000e-01 : f32
    %218 = vector.broadcast %cst_87 : f32 to vector<16x32xf32>
    %219 = arith.mulf %218, %217 : vector<16x32xf32>
    %220 = vector.extract_strided_slice %209 {offsets = [0, 64], sizes = [16, 32], strides = [1, 1]} : vector<16x128xf32> to vector<16x32xf32>
    %221 = vector.extract_strided_slice %209 {offsets = [0, 96], sizes = [16, 32], strides = [1, 1]} : vector<16x128xf32> to vector<16x32xf32>
    %cst_88 = arith.constant 1.000000e+00 : f32
    %222 = vector.broadcast %cst_88 : f32 to vector<16x32xf32>
    %223 = arith.addf %221, %222 : vector<16x32xf32>
    %cst_89 = arith.constant 5.000000e-01 : f32
    %224 = vector.broadcast %cst_89 : f32 to vector<16x32xf32>
    %225 = arith.mulf %224, %223 : vector<16x32xf32>
    %226 = arith.mulf %219, %192 : vector<16x32xf32>
    %227 = arith.mulf %214, %220 : vector<16x32xf32>
    %228 = arith.addf %226, %227 : vector<16x32xf32>
    %229 = math.tanh %228 : vector<16x32xf32>
    %230 = arith.mulf %225, %229 : vector<16x32xf32>
    %231 = vector.extract_strided_slice %230 {offsets = [0, 0], sizes = [8, 32], strides = [1, 1]} : vector<16x32xf32> to vector<8x32xf32>
    %c40_90 = arith.constant 40 : index
    %c0_91 = arith.constant 0 : index
    %232 = vector.load %arg9[%c40_90, %c0_91] : memref<64x32xf32, #tpu.memory_space<vmem>>, vector<8x32xf32>
    tpu.vector_store %arg9[%c40_90, %c0_91], %231 {strides = array<i32>} : memref<64x32xf32, #tpu.memory_space<vmem>>, vector<8x32xf32>,
    %233 = vector.extract_strided_slice %230 {offsets = [8, 0], sizes = [8, 32], strides = [1, 1]} : vector<16x32xf32> to vector<8x32xf32>
    %c16_92 = arith.constant 16 : index
    %c0_93 = arith.constant 0 : index
    %234 = vector.load %arg10[%c16_92, %c0_93] : memref<64x32xf32, #tpu.memory_space<vmem>>, vector<8x32xf32>
    tpu.vector_store %arg10[%c16_92, %c0_93], %233 {strides = array<i32>} : memref<64x32xf32, #tpu.memory_space<vmem>>, vector<8x32xf32>,
    %235 = arith.truncf %230 : vector<16x32xf32> to vector<16x32xbf16>
    %cst_94 = arith.constant dense<0.000000e+00> : vector<16x256xf32>
    %236 = tpu.matmul %235, %17, %cst_94 {dimension_numbers = #tpu.dot_dimension_numbers<[1], [0], [0], [1], [0, 0, 1, 1], [], []>} : vector<16x32xbf16>, vector<32x256xbf16>, vector<16x256xf32> -> vector<16x256xf32>
    %c48_95 = arith.constant 48 : index
    %c0_96 = arith.constant 0 : index
    %237 = vector.load %arg8[%c48_95, %c0_96] : memref<64x256xf32, #tpu.memory_space<vmem>>, vector<8x128xf32>
    %c8_97 = arith.constant 8 : index
    %c128_98 = arith.constant 128 : index
    %238 = vector.load %arg8[%c8_97, %c128_98] : memref<64x256xf32, #tpu.memory_space<vmem>>, vector<8x128xf32>
    %239 = tpu.concatenate %237, %238 in 0 : vector<8x128xf32>, vector<8x128xf32> -> vector<16x128xf32>
    %240 = vector.extract_strided_slice %236 {offsets = [0, 0], sizes = [8, 128], strides = [1, 1]} : vector<16x256xf32> to vector<8x128xf32>
    %241 = vector.extract_strided_slice %236 {offsets = [8, 128], sizes = [8, 128], strides = [1, 1]} : vector<16x256xf32> to vector<8x128xf32>
    %242 = tpu.concatenate %240, %241 in 0 : vector<8x128xf32>, vector<8x128xf32> -> vector<16x128xf32>
    %243 = arith.addf %239, %242 : vector<16x128xf32>
    %244 = arith.mulf %243, %8 : vector<16x128xf32>
    %245 = math.tanh %244 : vector<16x128xf32>
    %246 = vector.extract_strided_slice %245 {offsets = [0, 0], sizes = [16, 32], strides = [1, 1]} : vector<16x128xf32> to vector<16x32xf32>
    %cst_99 = arith.constant 1.000000e+00 : f32
    %247 = vector.broadcast %cst_99 : f32 to vector<16x32xf32>
    %248 = arith.addf %246, %247 : vector<16x32xf32>
    %cst_100 = arith.constant 5.000000e-01 : f32
    %249 = vector.broadcast %cst_100 : f32 to vector<16x32xf32>
    %250 = arith.mulf %249, %248 : vector<16x32xf32>
    %251 = vector.extract_strided_slice %245 {offsets = [0, 32], sizes = [16, 32], strides = [1, 1]} : vector<16x128xf32> to vector<16x32xf32>
    %cst_101 = arith.constant 1.000000e+00 : f32
    %252 = vector.broadcast %cst_101 : f32 to vector<16x32xf32>
    %253 = arith.addf %251, %252 : vector<16x32xf32>
    %cst_102 = arith.constant 5.000000e-01 : f32
    %254 = vector.broadcast %cst_102 : f32 to vector<16x32xf32>
    %255 = arith.mulf %254, %253 : vector<16x32xf32>
    %256 = vector.extract_strided_slice %245 {offsets = [0, 64], sizes = [16, 32], strides = [1, 1]} : vector<16x128xf32> to vector<16x32xf32>
    %257 = vector.extract_strided_slice %245 {offsets = [0, 96], sizes = [16, 32], strides = [1, 1]} : vector<16x128xf32> to vector<16x32xf32>
    %cst_103 = arith.constant 1.000000e+00 : f32
    %258 = vector.broadcast %cst_103 : f32 to vector<16x32xf32>
    %259 = arith.addf %257, %258 : vector<16x32xf32>
    %cst_104 = arith.constant 5.000000e-01 : f32
    %260 = vector.broadcast %cst_104 : f32 to vector<16x32xf32>
    %261 = arith.mulf %260, %259 : vector<16x32xf32>
    %262 = arith.mulf %255, %228 : vector<16x32xf32>
    %263 = arith.mulf %250, %256 : vector<16x32xf32>
    %264 = arith.addf %262, %263 : vector<16x32xf32>
    %265 = math.tanh %264 : vector<16x32xf32>
    %266 = arith.mulf %261, %265 : vector<16x32xf32>
    %267 = vector.extract_strided_slice %266 {offsets = [0, 0], sizes = [8, 32], strides = [1, 1]} : vector<16x32xf32> to vector<8x32xf32>
    %c48_105 = arith.constant 48 : index
    %c0_106 = arith.constant 0 : index
    %268 = vector.load %arg9[%c48_105, %c0_106] : memref<64x32xf32, #tpu.memory_space<vmem>>, vector<8x32xf32>
    tpu.vector_store %arg9[%c48_105, %c0_106], %267 {strides = array<i32>} : memref<64x32xf32, #tpu.memory_space<vmem>>, vector<8x32xf32>,
    %269 = vector.extract_strided_slice %266 {offsets = [8, 0], sizes = [8, 32], strides = [1, 1]} : vector<16x32xf32> to vector<8x32xf32>
    %c8_107 = arith.constant 8 : index
    %c0_108 = arith.constant 0 : index
    %270 = vector.load %arg10[%c8_107, %c0_108] : memref<64x32xf32, #tpu.memory_space<vmem>>, vector<8x32xf32>
    tpu.vector_store %arg10[%c8_107, %c0_108], %269 {strides = array<i32>} : memref<64x32xf32, #tpu.memory_space<vmem>>, vector<8x32xf32>,
    %271 = arith.truncf %266 : vector<16x32xf32> to vector<16x32xbf16>
    %cst_109 = arith.constant dense<0.000000e+00> : vector<16x256xf32>
    %272 = tpu.matmul %271, %17, %cst_109 {dimension_numbers = #tpu.dot_dimension_numbers<[1], [0], [0], [1], [0, 0, 1, 1], [], []>} : vector<16x32xbf16>, vector<32x256xbf16>, vector<16x256xf32> -> vector<16x256xf32>
    %c56_110 = arith.constant 56 : index
    %c0_111 = arith.constant 0 : index
    %273 = vector.load %arg8[%c56_110, %c0_111] : memref<64x256xf32, #tpu.memory_space<vmem>>, vector<8x128xf32>
    %c0_112 = arith.constant 0 : index
    %c128_113 = arith.constant 128 : index
    %274 = vector.load %arg8[%c0_112, %c128_113] : memref<64x256xf32, #tpu.memory_space<vmem>>, vector<8x128xf32>
    %275 = tpu.concatenate %273, %274 in 0 : vector<8x128xf32>, vector<8x128xf32> -> vector<16x128xf32>
    %276 = vector.extract_strided_slice %272 {offsets = [0, 0], sizes = [8, 128], strides = [1, 1]} : vector<16x256xf32> to vector<8x128xf32>
    %277 = vector.extract_strided_slice %272 {offsets = [8, 128], sizes = [8, 128], strides = [1, 1]} : vector<16x256xf32> to vector<8x128xf32>
    %278 = tpu.concatenate %276, %277 in 0 : vector<8x128xf32>, vector<8x128xf32> -> vector<16x128xf32>
    %279 = arith.addf %275, %278 : vector<16x128xf32>
    %280 = arith.mulf %279, %8 : vector<16x128xf32>
    %281 = math.tanh %280 : vector<16x128xf32>
    %282 = vector.extract_strided_slice %281 {offsets = [0, 0], sizes = [16, 32], strides = [1, 1]} : vector<16x128xf32> to vector<16x32xf32>
    %cst_114 = arith.constant 1.000000e+00 : f32
    %283 = vector.broadcast %cst_114 : f32 to vector<16x32xf32>
    %284 = arith.addf %282, %283 : vector<16x32xf32>
    %cst_115 = arith.constant 5.000000e-01 : f32
    %285 = vector.broadcast %cst_115 : f32 to vector<16x32xf32>
    %286 = arith.mulf %285, %284 : vector<16x32xf32>
    %287 = vector.extract_strided_slice %281 {offsets = [0, 32], sizes = [16, 32], strides = [1, 1]} : vector<16x128xf32> to vector<16x32xf32>
    %cst_116 = arith.constant 1.000000e+00 : f32
    %288 = vector.broadcast %cst_116 : f32 to vector<16x32xf32>
    %289 = arith.addf %287, %288 : vector<16x32xf32>
    %cst_117 = arith.constant 5.000000e-01 : f32
    %290 = vector.broadcast %cst_117 : f32 to vector<16x32xf32>
    %291 = arith.mulf %290, %289 : vector<16x32xf32>
    %292 = vector.extract_strided_slice %281 {offsets = [0, 64], sizes = [16, 32], strides = [1, 1]} : vector<16x128xf32> to vector<16x32xf32>
    %293 = vector.extract_strided_slice %281 {offsets = [0, 96], sizes = [16, 32], strides = [1, 1]} : vector<16x128xf32> to vector<16x32xf32>
    %cst_118 = arith.constant 1.000000e+00 : f32
    %294 = vector.broadcast %cst_118 : f32 to vector<16x32xf32>
    %295 = arith.addf %293, %294 : vector<16x32xf32>
    %cst_119 = arith.constant 5.000000e-01 : f32
    %296 = vector.broadcast %cst_119 : f32 to vector<16x32xf32>
    %297 = arith.mulf %296, %295 : vector<16x32xf32>
    %298 = arith.mulf %291, %264 : vector<16x32xf32>
    %299 = arith.mulf %286, %292 : vector<16x32xf32>
    %300 = arith.addf %298, %299 : vector<16x32xf32>
    %301 = math.tanh %300 : vector<16x32xf32>
    %302 = arith.mulf %297, %301 : vector<16x32xf32>
    %303 = vector.extract_strided_slice %302 {offsets = [0, 0], sizes = [8, 32], strides = [1, 1]} : vector<16x32xf32> to vector<8x32xf32>
    %c56_120 = arith.constant 56 : index
    %c0_121 = arith.constant 0 : index
    %304 = vector.load %arg9[%c56_120, %c0_121] : memref<64x32xf32, #tpu.memory_space<vmem>>, vector<8x32xf32>
    tpu.vector_store %arg9[%c56_120, %c0_121], %303 {strides = array<i32>} : memref<64x32xf32, #tpu.memory_space<vmem>>, vector<8x32xf32>,
    %305 = vector.extract_strided_slice %302 {offsets = [8, 0], sizes = [8, 32], strides = [1, 1]} : vector<16x32xf32> to vector<8x32xf32>
    %c0_122 = arith.constant 0 : index
    %c0_123 = arith.constant 0 : index
    %306 = vector.load %arg10[%c0_122, %c0_123] : memref<64x32xf32, #tpu.memory_space<vmem>>, vector<8x32xf32>
    tpu.vector_store %arg10[%c0_122, %c0_123], %305 {strides = array<i32>} : memref<64x32xf32, #tpu.memory_space<vmem>>, vector<8x32xf32>,
    %c0_124 = arith.constant 0 : index
    %c0_125 = arith.constant 0 : index
    %307 = vector.load %arg9[%c0_124, %c0_125] : memref<64x32xf32, #tpu.memory_space<vmem>>, vector<64x32xf32>
    %308 = arith.truncf %307 : vector<64x32xf32> to vector<64x32xbf16>
    %c0_126 = arith.constant 0 : index
    %c0_127 = arith.constant 0 : index
    %309 = vector.load %arg4[%c0_126, %c0_127] : memref<64x256xbf16, #tpu.memory_space<vmem>>, vector<32x256xbf16>
    %cst_128 = arith.constant dense<0.000000e+00> : vector<64x256xf32>
    %310 = tpu.matmul %308, %309, %cst_128 {dimension_numbers = #tpu.dot_dimension_numbers<[1], [0], [0], [1], [0, 0, 1, 1], [], []>} : vector<64x32xbf16>, vector<32x256xbf16>, vector<64x256xf32> -> vector<64x256xf32>
    %c0_129 = arith.constant 0 : index
    %c0_130 = arith.constant 0 : index
    %311 = vector.load %arg10[%c0_129, %c0_130] : memref<64x32xf32, #tpu.memory_space<vmem>>, vector<64x32xf32>
    %312 = arith.truncf %311 : vector<64x32xf32> to vector<64x32xbf16>
    %c32_131 = arith.constant 32 : index
    %c0_132 = arith.constant 0 : index
    %313 = vector.load %arg4[%c32_131, %c0_132] : memref<64x256xbf16, #tpu.memory_space<vmem>>, vector<32x256xbf16>
    %cst_133 = arith.constant dense<0.000000e+00> : vector<64x256xf32>
    %314 = tpu.matmul %312, %313, %cst_133 {dimension_numbers = #tpu.dot_dimension_numbers<[1], [0], [0], [1], [0, 0, 1, 1], [], []>} : vector<64x32xbf16>, vector<32x256xbf16>, vector<64x256xf32> -> vector<64x256xf32>
    %315 = arith.addf %310, %314 : vector<64x256xf32>
    %c0_134 = arith.constant 0 : index
    %c0_135 = arith.constant 0 : index
    %316 = vector.load %arg6[%c0_134, %c0_135] : memref<1x256xf32, #tpu.memory_space<vmem>>, vector<1x256xf32>
    %317 = vector.broadcast %316 : vector<1x256xf32> to vector<64x256xf32>
    %318 = arith.addf %315, %317 : vector<64x256xf32>
    %c0_136 = arith.constant 0 : index
    %c0_137 = arith.constant 0 : index
    %319 = vector.load %arg8[%c0_136, %c0_137] : memref<64x256xf32, #tpu.memory_space<vmem>>, vector<64x256xf32>
    tpu.vector_store %arg8[%c0_136, %c0_137], %318 {strides = array<i32>} : memref<64x256xf32, #tpu.memory_space<vmem>>, vector<64x256xf32>,
    %c0_138 = arith.constant 0 : index
    %c0_139 = arith.constant 0 : index
    %320 = vector.load %arg5[%c0_138, %c0_139] : memref<32x256xbf16, #tpu.memory_space<vmem>>, vector<32x256xbf16>
    %cst_140 = arith.constant 0.000000e+00 : f32
    %321 = vector.broadcast %cst_140 : f32 to vector<16x32xf32>
    %322 = arith.truncf %321 : vector<16x32xf32> to vector<16x32xbf16>
    %cst_141 = arith.constant dense<0.000000e+00> : vector<16x256xf32>
    %323 = tpu.matmul %322, %320, %cst_141 {dimension_numbers = #tpu.dot_dimension_numbers<[1], [0], [0], [1], [0, 0, 1, 1], [], []>} : vector<16x32xbf16>, vector<32x256xbf16>, vector<16x256xf32> -> vector<16x256xf32>
    %c0_142 = arith.constant 0 : index
    %c0_143 = arith.constant 0 : index
    %324 = vector.load %arg8[%c0_142, %c0_143] : memref<64x256xf32, #tpu.memory_space<vmem>>, vector<8x128xf32>
    %c56_144 = arith.constant 56 : index
    %c128_145 = arith.constant 128 : index
    %325 = vector.load %arg8[%c56_144, %c128_145] : memref<64x256xf32, #tpu.memory_space<vmem>>, vector<8x128xf32>
    %326 = tpu.concatenate %324, %325 in 0 : vector<8x128xf32>, vector<8x128xf32> -> vector<16x128xf32>
    %327 = vector.extract_strided_slice %323 {offsets = [0, 0], sizes = [8, 128], strides = [1, 1]} : vector<16x256xf32> to vector<8x128xf32>
    %328 = vector.extract_strided_slice %323 {offsets = [8, 128], sizes = [8, 128], strides = [1, 1]} : vector<16x256xf32> to vector<8x128xf32>
    %329 = tpu.concatenate %327, %328 in 0 : vector<8x128xf32>, vector<8x128xf32> -> vector<16x128xf32>
    %330 = arith.addf %326, %329 : vector<16x128xf32>
    %331 = arith.mulf %330, %8 : vector<16x128xf32>
    %332 = math.tanh %331 : vector<16x128xf32>
    %333 = vector.extract_strided_slice %332 {offsets = [0, 0], sizes = [16, 32], strides = [1, 1]} : vector<16x128xf32> to vector<16x32xf32>
    %cst_146 = arith.constant 1.000000e+00 : f32
    %334 = vector.broadcast %cst_146 : f32 to vector<16x32xf32>
    %335 = arith.addf %333, %334 : vector<16x32xf32>
    %cst_147 = arith.constant 5.000000e-01 : f32
    %336 = vector.broadcast %cst_147 : f32 to vector<16x32xf32>
    %337 = arith.mulf %336, %335 : vector<16x32xf32>
    %338 = vector.extract_strided_slice %332 {offsets = [0, 32], sizes = [16, 32], strides = [1, 1]} : vector<16x128xf32> to vector<16x32xf32>
    %cst_148 = arith.constant 1.000000e+00 : f32
    %339 = vector.broadcast %cst_148 : f32 to vector<16x32xf32>
    %340 = arith.addf %338, %339 : vector<16x32xf32>
    %cst_149 = arith.constant 5.000000e-01 : f32
    %341 = vector.broadcast %cst_149 : f32 to vector<16x32xf32>
    %342 = arith.mulf %341, %340 : vector<16x32xf32>
    %343 = vector.extract_strided_slice %332 {offsets = [0, 64], sizes = [16, 32], strides = [1, 1]} : vector<16x128xf32> to vector<16x32xf32>
    %344 = vector.extract_strided_slice %332 {offsets = [0, 96], sizes = [16, 32], strides = [1, 1]} : vector<16x128xf32> to vector<16x32xf32>
    %cst_150 = arith.constant 1.000000e+00 : f32
    %345 = vector.broadcast %cst_150 : f32 to vector<16x32xf32>
    %346 = arith.addf %344, %345 : vector<16x32xf32>
    %cst_151 = arith.constant 5.000000e-01 : f32
    %347 = vector.broadcast %cst_151 : f32 to vector<16x32xf32>
    %348 = arith.mulf %347, %346 : vector<16x32xf32>
    %349 = arith.mulf %342, %321 : vector<16x32xf32>
    %350 = arith.mulf %337, %343 : vector<16x32xf32>
    %351 = arith.addf %349, %350 : vector<16x32xf32>
    %352 = math.tanh %351 : vector<16x32xf32>
    %353 = arith.mulf %348, %352 : vector<16x32xf32>
    %354 = arith.truncf %353 : vector<16x32xf32> to vector<16x32xbf16>
    %cst_152 = arith.constant dense<0.000000e+00> : vector<16x256xf32>
    %355 = tpu.matmul %354, %320, %cst_152 {dimension_numbers = #tpu.dot_dimension_numbers<[1], [0], [0], [1], [0, 0, 1, 1], [], []>} : vector<16x32xbf16>, vector<32x256xbf16>, vector<16x256xf32> -> vector<16x256xf32>
    %c8_153 = arith.constant 8 : index
    %c0_154 = arith.constant 0 : index
    %356 = vector.load %arg8[%c8_153, %c0_154] : memref<64x256xf32, #tpu.memory_space<vmem>>, vector<8x128xf32>
    %c48_155 = arith.constant 48 : index
    %c128_156 = arith.constant 128 : index
    %357 = vector.load %arg8[%c48_155, %c128_156] : memref<64x256xf32, #tpu.memory_space<vmem>>, vector<8x128xf32>
    %358 = tpu.concatenate %356, %357 in 0 : vector<8x128xf32>, vector<8x128xf32> -> vector<16x128xf32>
    %359 = vector.extract_strided_slice %355 {offsets = [0, 0], sizes = [8, 128], strides = [1, 1]} : vector<16x256xf32> to vector<8x128xf32>
    %360 = vector.extract_strided_slice %355 {offsets = [8, 128], sizes = [8, 128], strides = [1, 1]} : vector<16x256xf32> to vector<8x128xf32>
    %361 = tpu.concatenate %359, %360 in 0 : vector<8x128xf32>, vector<8x128xf32> -> vector<16x128xf32>
    %362 = arith.addf %358, %361 : vector<16x128xf32>
    %363 = arith.mulf %362, %8 : vector<16x128xf32>
    %364 = math.tanh %363 : vector<16x128xf32>
    %365 = vector.extract_strided_slice %364 {offsets = [0, 0], sizes = [16, 32], strides = [1, 1]} : vector<16x128xf32> to vector<16x32xf32>
    %cst_157 = arith.constant 1.000000e+00 : f32
    %366 = vector.broadcast %cst_157 : f32 to vector<16x32xf32>
    %367 = arith.addf %365, %366 : vector<16x32xf32>
    %cst_158 = arith.constant 5.000000e-01 : f32
    %368 = vector.broadcast %cst_158 : f32 to vector<16x32xf32>
    %369 = arith.mulf %368, %367 : vector<16x32xf32>
    %370 = vector.extract_strided_slice %364 {offsets = [0, 32], sizes = [16, 32], strides = [1, 1]} : vector<16x128xf32> to vector<16x32xf32>
    %cst_159 = arith.constant 1.000000e+00 : f32
    %371 = vector.broadcast %cst_159 : f32 to vector<16x32xf32>
    %372 = arith.addf %370, %371 : vector<16x32xf32>
    %cst_160 = arith.constant 5.000000e-01 : f32
    %373 = vector.broadcast %cst_160 : f32 to vector<16x32xf32>
    %374 = arith.mulf %373, %372 : vector<16x32xf32>
    %375 = vector.extract_strided_slice %364 {offsets = [0, 64], sizes = [16, 32], strides = [1, 1]} : vector<16x128xf32> to vector<16x32xf32>
    %376 = vector.extract_strided_slice %364 {offsets = [0, 96], sizes = [16, 32], strides = [1, 1]} : vector<16x128xf32> to vector<16x32xf32>
    %cst_161 = arith.constant 1.000000e+00 : f32
    %377 = vector.broadcast %cst_161 : f32 to vector<16x32xf32>
    %378 = arith.addf %376, %377 : vector<16x32xf32>
    %cst_162 = arith.constant 5.000000e-01 : f32
    %379 = vector.broadcast %cst_162 : f32 to vector<16x32xf32>
    %380 = arith.mulf %379, %378 : vector<16x32xf32>
    %381 = arith.mulf %374, %351 : vector<16x32xf32>
    %382 = arith.mulf %369, %375 : vector<16x32xf32>
    %383 = arith.addf %381, %382 : vector<16x32xf32>
    %384 = math.tanh %383 : vector<16x32xf32>
    %385 = arith.mulf %380, %384 : vector<16x32xf32>
    %386 = arith.truncf %385 : vector<16x32xf32> to vector<16x32xbf16>
    %cst_163 = arith.constant dense<0.000000e+00> : vector<16x256xf32>
    %387 = tpu.matmul %386, %320, %cst_163 {dimension_numbers = #tpu.dot_dimension_numbers<[1], [0], [0], [1], [0, 0, 1, 1], [], []>} : vector<16x32xbf16>, vector<32x256xbf16>, vector<16x256xf32> -> vector<16x256xf32>
    %c16_164 = arith.constant 16 : index
    %c0_165 = arith.constant 0 : index
    %388 = vector.load %arg8[%c16_164, %c0_165] : memref<64x256xf32, #tpu.memory_space<vmem>>, vector<8x128xf32>
    %c40_166 = arith.constant 40 : index
    %c128_167 = arith.constant 128 : index
    %389 = vector.load %arg8[%c40_166, %c128_167] : memref<64x256xf32, #tpu.memory_space<vmem>>, vector<8x128xf32>
    %390 = tpu.concatenate %388, %389 in 0 : vector<8x128xf32>, vector<8x128xf32> -> vector<16x128xf32>
    %391 = vector.extract_strided_slice %387 {offsets = [0, 0], sizes = [8, 128], strides = [1, 1]} : vector<16x256xf32> to vector<8x128xf32>
    %392 = vector.extract_strided_slice %387 {offsets = [8, 128], sizes = [8, 128], strides = [1, 1]} : vector<16x256xf32> to vector<8x128xf32>
    %393 = tpu.concatenate %391, %392 in 0 : vector<8x128xf32>, vector<8x128xf32> -> vector<16x128xf32>
    %394 = arith.addf %390, %393 : vector<16x128xf32>
    %395 = arith.mulf %394, %8 : vector<16x128xf32>
    %396 = math.tanh %395 : vector<16x128xf32>
    %397 = vector.extract_strided_slice %396 {offsets = [0, 0], sizes = [16, 32], strides = [1, 1]} : vector<16x128xf32> to vector<16x32xf32>
    %cst_168 = arith.constant 1.000000e+00 : f32
    %398 = vector.broadcast %cst_168 : f32 to vector<16x32xf32>
    %399 = arith.addf %397, %398 : vector<16x32xf32>
    %cst_169 = arith.constant 5.000000e-01 : f32
    %400 = vector.broadcast %cst_169 : f32 to vector<16x32xf32>
    %401 = arith.mulf %400, %399 : vector<16x32xf32>
    %402 = vector.extract_strided_slice %396 {offsets = [0, 32], sizes = [16, 32], strides = [1, 1]} : vector<16x128xf32> to vector<16x32xf32>
    %cst_170 = arith.constant 1.000000e+00 : f32
    %403 = vector.broadcast %cst_170 : f32 to vector<16x32xf32>
    %404 = arith.addf %402, %403 : vector<16x32xf32>
    %cst_171 = arith.constant 5.000000e-01 : f32
    %405 = vector.broadcast %cst_171 : f32 to vector<16x32xf32>
    %406 = arith.mulf %405, %404 : vector<16x32xf32>
    %407 = vector.extract_strided_slice %396 {offsets = [0, 64], sizes = [16, 32], strides = [1, 1]} : vector<16x128xf32> to vector<16x32xf32>
    %408 = vector.extract_strided_slice %396 {offsets = [0, 96], sizes = [16, 32], strides = [1, 1]} : vector<16x128xf32> to vector<16x32xf32>
    %cst_172 = arith.constant 1.000000e+00 : f32
    %409 = vector.broadcast %cst_172 : f32 to vector<16x32xf32>
    %410 = arith.addf %408, %409 : vector<16x32xf32>
    %cst_173 = arith.constant 5.000000e-01 : f32
    %411 = vector.broadcast %cst_173 : f32 to vector<16x32xf32>
    %412 = arith.mulf %411, %410 : vector<16x32xf32>
    %413 = arith.mulf %406, %383 : vector<16x32xf32>
    %414 = arith.mulf %401, %407 : vector<16x32xf32>
    %415 = arith.addf %413, %414 : vector<16x32xf32>
    %416 = math.tanh %415 : vector<16x32xf32>
    %417 = arith.mulf %412, %416 : vector<16x32xf32>
    %418 = arith.truncf %417 : vector<16x32xf32> to vector<16x32xbf16>
    %cst_174 = arith.constant dense<0.000000e+00> : vector<16x256xf32>
    %419 = tpu.matmul %418, %320, %cst_174 {dimension_numbers = #tpu.dot_dimension_numbers<[1], [0], [0], [1], [0, 0, 1, 1], [], []>} : vector<16x32xbf16>, vector<32x256xbf16>, vector<16x256xf32> -> vector<16x256xf32>
    %c24_175 = arith.constant 24 : index
    %c0_176 = arith.constant 0 : index
    %420 = vector.load %arg8[%c24_175, %c0_176] : memref<64x256xf32, #tpu.memory_space<vmem>>, vector<8x128xf32>
    %c32_177 = arith.constant 32 : index
    %c128_178 = arith.constant 128 : index
    %421 = vector.load %arg8[%c32_177, %c128_178] : memref<64x256xf32, #tpu.memory_space<vmem>>, vector<8x128xf32>
    %422 = tpu.concatenate %420, %421 in 0 : vector<8x128xf32>, vector<8x128xf32> -> vector<16x128xf32>
    %423 = vector.extract_strided_slice %419 {offsets = [0, 0], sizes = [8, 128], strides = [1, 1]} : vector<16x256xf32> to vector<8x128xf32>
    %424 = vector.extract_strided_slice %419 {offsets = [8, 128], sizes = [8, 128], strides = [1, 1]} : vector<16x256xf32> to vector<8x128xf32>
    %425 = tpu.concatenate %423, %424 in 0 : vector<8x128xf32>, vector<8x128xf32> -> vector<16x128xf32>
    %426 = arith.addf %422, %425 : vector<16x128xf32>
    %427 = arith.mulf %426, %8 : vector<16x128xf32>
    %428 = math.tanh %427 : vector<16x128xf32>
    %429 = vector.extract_strided_slice %428 {offsets = [0, 0], sizes = [16, 32], strides = [1, 1]} : vector<16x128xf32> to vector<16x32xf32>
    %cst_179 = arith.constant 1.000000e+00 : f32
    %430 = vector.broadcast %cst_179 : f32 to vector<16x32xf32>
    %431 = arith.addf %429, %430 : vector<16x32xf32>
    %cst_180 = arith.constant 5.000000e-01 : f32
    %432 = vector.broadcast %cst_180 : f32 to vector<16x32xf32>
    %433 = arith.mulf %432, %431 : vector<16x32xf32>
    %434 = vector.extract_strided_slice %428 {offsets = [0, 32], sizes = [16, 32], strides = [1, 1]} : vector<16x128xf32> to vector<16x32xf32>
    %cst_181 = arith.constant 1.000000e+00 : f32
    %435 = vector.broadcast %cst_181 : f32 to vector<16x32xf32>
    %436 = arith.addf %434, %435 : vector<16x32xf32>
    %cst_182 = arith.constant 5.000000e-01 : f32
    %437 = vector.broadcast %cst_182 : f32 to vector<16x32xf32>
    %438 = arith.mulf %437, %436 : vector<16x32xf32>
    %439 = vector.extract_strided_slice %428 {offsets = [0, 64], sizes = [16, 32], strides = [1, 1]} : vector<16x128xf32> to vector<16x32xf32>
    %440 = vector.extract_strided_slice %428 {offsets = [0, 96], sizes = [16, 32], strides = [1, 1]} : vector<16x128xf32> to vector<16x32xf32>
    %cst_183 = arith.constant 1.000000e+00 : f32
    %441 = vector.broadcast %cst_183 : f32 to vector<16x32xf32>
    %442 = arith.addf %440, %441 : vector<16x32xf32>
    %cst_184 = arith.constant 5.000000e-01 : f32
    %443 = vector.broadcast %cst_184 : f32 to vector<16x32xf32>
    %444 = arith.mulf %443, %442 : vector<16x32xf32>
    %445 = arith.mulf %438, %415 : vector<16x32xf32>
    %446 = arith.mulf %433, %439 : vector<16x32xf32>
    %447 = arith.addf %445, %446 : vector<16x32xf32>
    %448 = math.tanh %447 : vector<16x32xf32>
    %449 = arith.mulf %444, %448 : vector<16x32xf32>
    %450 = arith.truncf %449 : vector<16x32xf32> to vector<16x32xbf16>
    %cst_185 = arith.constant dense<0.000000e+00> : vector<16x256xf32>
    %451 = tpu.matmul %450, %320, %cst_185 {dimension_numbers = #tpu.dot_dimension_numbers<[1], [0], [0], [1], [0, 0, 1, 1], [], []>} : vector<16x32xbf16>, vector<32x256xbf16>, vector<16x256xf32> -> vector<16x256xf32>
    %c32_186 = arith.constant 32 : index
    %c0_187 = arith.constant 0 : index
    %452 = vector.load %arg8[%c32_186, %c0_187] : memref<64x256xf32, #tpu.memory_space<vmem>>, vector<8x128xf32>
    %c24_188 = arith.constant 24 : index
    %c128_189 = arith.constant 128 : index
    %453 = vector.load %arg8[%c24_188, %c128_189] : memref<64x256xf32, #tpu.memory_space<vmem>>, vector<8x128xf32>
    %454 = tpu.concatenate %452, %453 in 0 : vector<8x128xf32>, vector<8x128xf32> -> vector<16x128xf32>
    %455 = vector.extract_strided_slice %451 {offsets = [0, 0], sizes = [8, 128], strides = [1, 1]} : vector<16x256xf32> to vector<8x128xf32>
    %456 = vector.extract_strided_slice %451 {offsets = [8, 128], sizes = [8, 128], strides = [1, 1]} : vector<16x256xf32> to vector<8x128xf32>
    %457 = tpu.concatenate %455, %456 in 0 : vector<8x128xf32>, vector<8x128xf32> -> vector<16x128xf32>
    %458 = arith.addf %454, %457 : vector<16x128xf32>
    %459 = arith.mulf %458, %8 : vector<16x128xf32>
    %460 = math.tanh %459 : vector<16x128xf32>
    %461 = vector.extract_strided_slice %460 {offsets = [0, 0], sizes = [16, 32], strides = [1, 1]} : vector<16x128xf32> to vector<16x32xf32>
    %cst_190 = arith.constant 1.000000e+00 : f32
    %462 = vector.broadcast %cst_190 : f32 to vector<16x32xf32>
    %463 = arith.addf %461, %462 : vector<16x32xf32>
    %cst_191 = arith.constant 5.000000e-01 : f32
    %464 = vector.broadcast %cst_191 : f32 to vector<16x32xf32>
    %465 = arith.mulf %464, %463 : vector<16x32xf32>
    %466 = vector.extract_strided_slice %460 {offsets = [0, 32], sizes = [16, 32], strides = [1, 1]} : vector<16x128xf32> to vector<16x32xf32>
    %cst_192 = arith.constant 1.000000e+00 : f32
    %467 = vector.broadcast %cst_192 : f32 to vector<16x32xf32>
    %468 = arith.addf %466, %467 : vector<16x32xf32>
    %cst_193 = arith.constant 5.000000e-01 : f32
    %469 = vector.broadcast %cst_193 : f32 to vector<16x32xf32>
    %470 = arith.mulf %469, %468 : vector<16x32xf32>
    %471 = vector.extract_strided_slice %460 {offsets = [0, 64], sizes = [16, 32], strides = [1, 1]} : vector<16x128xf32> to vector<16x32xf32>
    %472 = vector.extract_strided_slice %460 {offsets = [0, 96], sizes = [16, 32], strides = [1, 1]} : vector<16x128xf32> to vector<16x32xf32>
    %cst_194 = arith.constant 1.000000e+00 : f32
    %473 = vector.broadcast %cst_194 : f32 to vector<16x32xf32>
    %474 = arith.addf %472, %473 : vector<16x32xf32>
    %cst_195 = arith.constant 5.000000e-01 : f32
    %475 = vector.broadcast %cst_195 : f32 to vector<16x32xf32>
    %476 = arith.mulf %475, %474 : vector<16x32xf32>
    %477 = arith.mulf %470, %447 : vector<16x32xf32>
    %478 = arith.mulf %465, %471 : vector<16x32xf32>
    %479 = arith.addf %477, %478 : vector<16x32xf32>
    %480 = math.tanh %479 : vector<16x32xf32>
    %481 = arith.mulf %476, %480 : vector<16x32xf32>
    %482 = arith.truncf %481 : vector<16x32xf32> to vector<16x32xbf16>
    %cst_196 = arith.constant dense<0.000000e+00> : vector<16x256xf32>
    %483 = tpu.matmul %482, %320, %cst_196 {dimension_numbers = #tpu.dot_dimension_numbers<[1], [0], [0], [1], [0, 0, 1, 1], [], []>} : vector<16x32xbf16>, vector<32x256xbf16>, vector<16x256xf32> -> vector<16x256xf32>
    %c40_197 = arith.constant 40 : index
    %c0_198 = arith.constant 0 : index
    %484 = vector.load %arg8[%c40_197, %c0_198] : memref<64x256xf32, #tpu.memory_space<vmem>>, vector<8x128xf32>
    %c16_199 = arith.constant 16 : index
    %c128_200 = arith.constant 128 : index
    %485 = vector.load %arg8[%c16_199, %c128_200] : memref<64x256xf32, #tpu.memory_space<vmem>>, vector<8x128xf32>
    %486 = tpu.concatenate %484, %485 in 0 : vector<8x128xf32>, vector<8x128xf32> -> vector<16x128xf32>
    %487 = vector.extract_strided_slice %483 {offsets = [0, 0], sizes = [8, 128], strides = [1, 1]} : vector<16x256xf32> to vector<8x128xf32>
    %488 = vector.extract_strided_slice %483 {offsets = [8, 128], sizes = [8, 128], strides = [1, 1]} : vector<16x256xf32> to vector<8x128xf32>
    %489 = tpu.concatenate %487, %488 in 0 : vector<8x128xf32>, vector<8x128xf32> -> vector<16x128xf32>
    %490 = arith.addf %486, %489 : vector<16x128xf32>
    %491 = arith.mulf %490, %8 : vector<16x128xf32>
    %492 = math.tanh %491 : vector<16x128xf32>
    %493 = vector.extract_strided_slice %492 {offsets = [0, 0], sizes = [16, 32], strides = [1, 1]} : vector<16x128xf32> to vector<16x32xf32>
    %cst_201 = arith.constant 1.000000e+00 : f32
    %494 = vector.broadcast %cst_201 : f32 to vector<16x32xf32>
    %495 = arith.addf %493, %494 : vector<16x32xf32>
    %cst_202 = arith.constant 5.000000e-01 : f32
    %496 = vector.broadcast %cst_202 : f32 to vector<16x32xf32>
    %497 = arith.mulf %496, %495 : vector<16x32xf32>
    %498 = vector.extract_strided_slice %492 {offsets = [0, 32], sizes = [16, 32], strides = [1, 1]} : vector<16x128xf32> to vector<16x32xf32>
    %cst_203 = arith.constant 1.000000e+00 : f32
    %499 = vector.broadcast %cst_203 : f32 to vector<16x32xf32>
    %500 = arith.addf %498, %499 : vector<16x32xf32>
    %cst_204 = arith.constant 5.000000e-01 : f32
    %501 = vector.broadcast %cst_204 : f32 to vector<16x32xf32>
    %502 = arith.mulf %501, %500 : vector<16x32xf32>
    %503 = vector.extract_strided_slice %492 {offsets = [0, 64], sizes = [16, 32], strides = [1, 1]} : vector<16x128xf32> to vector<16x32xf32>
    %504 = vector.extract_strided_slice %492 {offsets = [0, 96], sizes = [16, 32], strides = [1, 1]} : vector<16x128xf32> to vector<16x32xf32>
    %cst_205 = arith.constant 1.000000e+00 : f32
    %505 = vector.broadcast %cst_205 : f32 to vector<16x32xf32>
    %506 = arith.addf %504, %505 : vector<16x32xf32>
    %cst_206 = arith.constant 5.000000e-01 : f32
    %507 = vector.broadcast %cst_206 : f32 to vector<16x32xf32>
    %508 = arith.mulf %507, %506 : vector<16x32xf32>
    %509 = arith.mulf %502, %479 : vector<16x32xf32>
    %510 = arith.mulf %497, %503 : vector<16x32xf32>
    %511 = arith.addf %509, %510 : vector<16x32xf32>
    %512 = math.tanh %511 : vector<16x32xf32>
    %513 = arith.mulf %508, %512 : vector<16x32xf32>
    %514 = arith.truncf %513 : vector<16x32xf32> to vector<16x32xbf16>
    %cst_207 = arith.constant dense<0.000000e+00> : vector<16x256xf32>
    %515 = tpu.matmul %514, %320, %cst_207 {dimension_numbers = #tpu.dot_dimension_numbers<[1], [0], [0], [1], [0, 0, 1, 1], [], []>} : vector<16x32xbf16>, vector<32x256xbf16>, vector<16x256xf32> -> vector<16x256xf32>
    %c48_208 = arith.constant 48 : index
    %c0_209 = arith.constant 0 : index
    %516 = vector.load %arg8[%c48_208, %c0_209] : memref<64x256xf32, #tpu.memory_space<vmem>>, vector<8x128xf32>
    %c8_210 = arith.constant 8 : index
    %c128_211 = arith.constant 128 : index
    %517 = vector.load %arg8[%c8_210, %c128_211] : memref<64x256xf32, #tpu.memory_space<vmem>>, vector<8x128xf32>
    %518 = tpu.concatenate %516, %517 in 0 : vector<8x128xf32>, vector<8x128xf32> -> vector<16x128xf32>
    %519 = vector.extract_strided_slice %515 {offsets = [0, 0], sizes = [8, 128], strides = [1, 1]} : vector<16x256xf32> to vector<8x128xf32>
    %520 = vector.extract_strided_slice %515 {offsets = [8, 128], sizes = [8, 128], strides = [1, 1]} : vector<16x256xf32> to vector<8x128xf32>
    %521 = tpu.concatenate %519, %520 in 0 : vector<8x128xf32>, vector<8x128xf32> -> vector<16x128xf32>
    %522 = arith.addf %518, %521 : vector<16x128xf32>
    %523 = arith.mulf %522, %8 : vector<16x128xf32>
    %524 = math.tanh %523 : vector<16x128xf32>
    %525 = vector.extract_strided_slice %524 {offsets = [0, 0], sizes = [16, 32], strides = [1, 1]} : vector<16x128xf32> to vector<16x32xf32>
    %cst_212 = arith.constant 1.000000e+00 : f32
    %526 = vector.broadcast %cst_212 : f32 to vector<16x32xf32>
    %527 = arith.addf %525, %526 : vector<16x32xf32>
    %cst_213 = arith.constant 5.000000e-01 : f32
    %528 = vector.broadcast %cst_213 : f32 to vector<16x32xf32>
    %529 = arith.mulf %528, %527 : vector<16x32xf32>
    %530 = vector.extract_strided_slice %524 {offsets = [0, 32], sizes = [16, 32], strides = [1, 1]} : vector<16x128xf32> to vector<16x32xf32>
    %cst_214 = arith.constant 1.000000e+00 : f32
    %531 = vector.broadcast %cst_214 : f32 to vector<16x32xf32>
    %532 = arith.addf %530, %531 : vector<16x32xf32>
    %cst_215 = arith.constant 5.000000e-01 : f32
    %533 = vector.broadcast %cst_215 : f32 to vector<16x32xf32>
    %534 = arith.mulf %533, %532 : vector<16x32xf32>
    %535 = vector.extract_strided_slice %524 {offsets = [0, 64], sizes = [16, 32], strides = [1, 1]} : vector<16x128xf32> to vector<16x32xf32>
    %536 = vector.extract_strided_slice %524 {offsets = [0, 96], sizes = [16, 32], strides = [1, 1]} : vector<16x128xf32> to vector<16x32xf32>
    %cst_216 = arith.constant 1.000000e+00 : f32
    %537 = vector.broadcast %cst_216 : f32 to vector<16x32xf32>
    %538 = arith.addf %536, %537 : vector<16x32xf32>
    %cst_217 = arith.constant 5.000000e-01 : f32
    %539 = vector.broadcast %cst_217 : f32 to vector<16x32xf32>
    %540 = arith.mulf %539, %538 : vector<16x32xf32>
    %541 = arith.mulf %534, %511 : vector<16x32xf32>
    %542 = arith.mulf %529, %535 : vector<16x32xf32>
    %543 = arith.addf %541, %542 : vector<16x32xf32>
    %544 = math.tanh %543 : vector<16x32xf32>
    %545 = arith.mulf %540, %544 : vector<16x32xf32>
    %546 = arith.truncf %545 : vector<16x32xf32> to vector<16x32xbf16>
    %cst_218 = arith.constant dense<0.000000e+00> : vector<16x256xf32>
    %547 = tpu.matmul %546, %320, %cst_218 {dimension_numbers = #tpu.dot_dimension_numbers<[1], [0], [0], [1], [0, 0, 1, 1], [], []>} : vector<16x32xbf16>, vector<32x256xbf16>, vector<16x256xf32> -> vector<16x256xf32>
    %c56_219 = arith.constant 56 : index
    %c0_220 = arith.constant 0 : index
    %548 = vector.load %arg8[%c56_219, %c0_220] : memref<64x256xf32, #tpu.memory_space<vmem>>, vector<8x128xf32>
    %c0_221 = arith.constant 0 : index
    %c128_222 = arith.constant 128 : index
    %549 = vector.load %arg8[%c0_221, %c128_222] : memref<64x256xf32, #tpu.memory_space<vmem>>, vector<8x128xf32>
    %550 = tpu.concatenate %548, %549 in 0 : vector<8x128xf32>, vector<8x128xf32> -> vector<16x128xf32>
    %551 = vector.extract_strided_slice %547 {offsets = [0, 0], sizes = [8, 128], strides = [1, 1]} : vector<16x256xf32> to vector<8x128xf32>
    %552 = vector.extract_strided_slice %547 {offsets = [8, 128], sizes = [8, 128], strides = [1, 1]} : vector<16x256xf32> to vector<8x128xf32>
    %553 = tpu.concatenate %551, %552 in 0 : vector<8x128xf32>, vector<8x128xf32> -> vector<16x128xf32>
    %554 = arith.addf %550, %553 : vector<16x128xf32>
    %555 = arith.mulf %554, %8 : vector<16x128xf32>
    %556 = math.tanh %555 : vector<16x128xf32>
    %557 = vector.extract_strided_slice %556 {offsets = [0, 0], sizes = [16, 32], strides = [1, 1]} : vector<16x128xf32> to vector<16x32xf32>
    %cst_223 = arith.constant 1.000000e+00 : f32
    %558 = vector.broadcast %cst_223 : f32 to vector<16x32xf32>
    %559 = arith.addf %557, %558 : vector<16x32xf32>
    %cst_224 = arith.constant 5.000000e-01 : f32
    %560 = vector.broadcast %cst_224 : f32 to vector<16x32xf32>
    %561 = arith.mulf %560, %559 : vector<16x32xf32>
    %562 = vector.extract_strided_slice %556 {offsets = [0, 32], sizes = [16, 32], strides = [1, 1]} : vector<16x128xf32> to vector<16x32xf32>
    %cst_225 = arith.constant 1.000000e+00 : f32
    %563 = vector.broadcast %cst_225 : f32 to vector<16x32xf32>
    %564 = arith.addf %562, %563 : vector<16x32xf32>
    %cst_226 = arith.constant 5.000000e-01 : f32
    %565 = vector.broadcast %cst_226 : f32 to vector<16x32xf32>
    %566 = arith.mulf %565, %564 : vector<16x32xf32>
    %567 = vector.extract_strided_slice %556 {offsets = [0, 64], sizes = [16, 32], strides = [1, 1]} : vector<16x128xf32> to vector<16x32xf32>
    %568 = vector.extract_strided_slice %556 {offsets = [0, 96], sizes = [16, 32], strides = [1, 1]} : vector<16x128xf32> to vector<16x32xf32>
    %cst_227 = arith.constant 1.000000e+00 : f32
    %569 = vector.broadcast %cst_227 : f32 to vector<16x32xf32>
    %570 = arith.addf %568, %569 : vector<16x32xf32>
    %cst_228 = arith.constant 5.000000e-01 : f32
    %571 = vector.broadcast %cst_228 : f32 to vector<16x32xf32>
    %572 = arith.mulf %571, %570 : vector<16x32xf32>
    %573 = arith.mulf %566, %543 : vector<16x32xf32>
    %574 = arith.mulf %561, %567 : vector<16x32xf32>
    %575 = arith.addf %573, %574 : vector<16x32xf32>
    %576 = math.tanh %575 : vector<16x32xf32>
    %577 = arith.mulf %572, %576 : vector<16x32xf32>
    %578 = vector.extract_strided_slice %577 {offsets = [0, 0], sizes = [8, 32], strides = [1, 1]} : vector<16x32xf32> to vector<8x32xf32>
    %c0_229 = arith.constant 0 : index
    %c0_230 = arith.constant 0 : index
    %579 = vector.load %arg7[%c0_229, %c0_230] : memref<8x64xf32, #tpu.memory_space<vmem>>, vector<8x32xf32>
    tpu.vector_store %arg7[%c0_229, %c0_230], %578 {strides = array<i32>} : memref<8x64xf32, #tpu.memory_space<vmem>>, vector<8x32xf32>,
    %580 = vector.extract_strided_slice %577 {offsets = [8, 0], sizes = [8, 32], strides = [1, 1]} : vector<16x32xf32> to vector<8x32xf32>
    %c0_231 = arith.constant 0 : index
    %c32_232 = arith.constant 32 : index
    %581 = vector.load %arg7[%c0_231, %c32_232] : memref<8x64xf32, #tpu.memory_space<vmem>>, vector<8x32xf32>
    tpu.vector_store %arg7[%c0_231, %c32_232], %580 {strides = array<i32>} : memref<8x64xf32, #tpu.memory_space<vmem>>, vector<8x32xf32>,
    return
  }
}

</mosaic_0001>

<bundles_post_ra>
// kernel: encoder_forward.1
= control target key start
LH: loop header
LB: loop body
LE: loop exit
PB: predicated region body
PF: predicated region fallthrough
CT: control target
= control target key end

     0   :  { %12 = vsyncpa [#allocation6], 0  ;;  %s2999_s0 = inlined_call_operand.vmem [shape: f32[64,16], index: 0, kind: input, shape index: {}]   ;;  %s3000_s1 = inlined_call_operand.hbm [shape: bf16[16,256], index: 1, kind: input, shape index: {}]   ;;  %s3001_s2 = inlined_call_operand.vmem [shape: bf16[32,256], index: 2, kind: input, shape index: {}]   ;;  %s3002_s3 = inlined_call_operand.vmem [shape: f32[1,256], index: 3, kind: input, shape index: {}]   ;;  %s3003_s4 = inlined_call_operand.vmem [shape: bf16[64,256], index: 4, kind: input, shape index: {}]   ;;  %s3004_s5 = inlined_call_operand.vmem [shape: bf16[32,256], index: 5, kind: input, shape index: {}]   ;;  %s3005_s6 = inlined_call_operand.vmem [shape: f32[1,256], index: 6, kind: input, shape index: {}]   ;;  %s3006_s7 = inlined_call_operand.hbm [shape: f32[8,64], index: 7, kind: output, shape index: {}]  }
   0x1   :  { %13 = vsyncpa [#allocation7], 0  ;;  %s2391_s24 = smov [#allocation5]   ;;  %s2343_s28 = scalar_lea.hbm %s3000_s1, 256 }
   0x2   :  { %s21_s25 = sshll.u32 %s2391_s24, 4  ;;  %p2344_p0 = scmp.ne.s32.totalorder %s3000_s1, %s2343_s28  ;;  %s22_s25 = int_to_ptr.vmem [resolvable:$true] %s21_s25 }
   0x3   :  { %p2347_p1 = scmp.lt.u32.totalorder %s2343_s28, %s3000_s1 }
   0x5   :  { %p2349_p2 = pnand %p2347_p1, %p2344_p0 }
   0x7   :  { %2352 = shalt.err (!%p2349_p2)
}
   0x8   :  { %s2353_s10 = scalar_lea.vmem %s22_s25, 256  ;;  %p2358_p4 = scmp.lt.s32.totalorder %s22_s25, %s22_s25 }
   0x9   :  { %p2354_p3 = scmp.ne.s32.totalorder %s22_s25, %s2353_s10  ;;  %p2359_p5 = scmp.lt.s32.totalorder %s2353_s10, %s2353_s10 }
   0xb   :  { %p2360_p6 = por %p2359_p5, %p2358_p4 }
   0xd   :  { %p2361_p7 = pnand %p2360_p6, %p2354_p3 }
   0xf   :  { %2364 = shalt.err (!%p2361_p7)
}
  0x10   :  { %s2392_s11 = smov 128   ;;  %s2393_s12 = smov 8  }
  0x11   :  { %27 = dma.hbm_to_vmem [thread:$0]  %s3000_s1, 256, %s22_s25, [#allocation6], %s2392_s11, %s2392_s11, %s2393_s12  }
  0x12   :  { %2387 = dma.done.wait [#allocation6], 256  }
  0x13   :  { %2388 = vsyncadd [#allocation6], 4294967040  ;;  %v2394_v0 = vmov 0   ;;  %v2188_v1 = vld [vmem:[#allocation5 + $0x4] ss:$8 sps:$4 sm:$0xff]   ;;  %vm84_vm0 = vcmask 130048   ;;  %v42_v19 = vlaneseq }
  0x14   :  { %129 = vmatprep.mubr.bf16.mxu0 %v2394_v0  ;;  %246 = vmatprep.mubr.bf16.mxu1 %v2394_v0  ;;  %v2456_v2 = vld [vmem:[%s3001_s2 + $0x4] ss:$8 sps:$4 sm:$0xff]   ;;  %v2192_v3 = vld [vmem:[#allocation5] ss:$8 sps:$4 sm:$0xff]   ;;  %v2474_v8 = vld [vmem:[%s3001_s2 + $0x14] ss:$8 sps:$4 sm:$0xff]  }
  0x15   :  { %97 = vmatprep.subr.bf16.mxu0 %v2188_v1  ;;  %v2461_v4 = vld [vmem:[%s3001_s2] ss:$8 sps:$4 sm:$0xff]   ;;  %214 = vmatprep.subr.bf16.mxu1 %v2456_v2  ;;  %v2479_v9 = vld [vmem:[%s3001_s2 + $0x10] ss:$8 sps:$4 sm:$0xff]   ;;  %v2521_v20 = vshrl.u32 %v42_v19, 7  ;;  %v43_v21 = vand.u32 127, %v42_v19 }
  0x16   :  { %v48_v5 = vld [vmem:[%s2999_s0] sm:$0xff]  ;;  %v49_v6 = vld [vmem:[%s2999_s0 + $0x8] sm:$0xff]  ;;  %98 = vmatpush1.bf16.msra.mxu0 %v2192_v3  ;;  %215 = vmatpush1.bf16.msra.mxu1 %v2461_v4  ;;  %v50_v10 = vld [vmem:[%s2999_s0 + $0x10] sm:$0xff]  ;;  %v2395_v34 = vmov 0.5   ;;  %vm210_vm4 = vcmask 261120   ;;  %vm2103_vm5 = vcmask 523520  }
  0x17   :  { %v56_v7 = vpack.c.bf16 %v49_v6, %v48_v5  ;;  %630 = vmatprep.subr.bf16.mxu0 %v2456_v2  ;;  %216 = vmatprep.subr.bf16.mxu1 %v2474_v8  ;;  %v51_v11 = vld [vmem:[%s2999_s0 + $0x18] sm:$0xff]  ;;  %v52_v13 = vld [vmem:[%s2999_s0 + $0x20] sm:$0xff]  ;;  %v53_v14 = vld [vmem:[%s2999_s0 + $0x28] sm:$0xff]  ;;  %v70_v22 = vsub.s32 1, %v2521_v20  ;;  %v66_v24 = vsub.s32 0, %v2521_v20  ;;  %vm44_vm1 = vcmp.ge.s32.totalorder %v43_v21, 64 }
  0x18   :  { %v57_v12 = vpack.c.bf16 %v51_v11, %v50_v10  ;;  %v58_v15 = vpack.c.bf16 %v53_v14, %v52_v13  ;;  %v54_v16 = vld [vmem:[%s2999_s0 + $0x30] sm:$0xff]  ;;  %v55_v17 = vld [vmem:[%s2999_s0 + $0x38] sm:$0xff]  ;;  %v62_v23 = vld [vmem:[%s3002_s3] sm:$0x3]  ;;  %vm45_vm2 = vcmp.lt.s32.totalorder %v43_v21, 96  ;;  %s2396_s0 = smov 64  }
  0x19   :  { %2122 = vmatmul.mubr.msk.bf16.vlgmr.msra.gmra.mrb[0].mxu0 %vm84_vm0, %v56_v7  ;;  %v59_v18 = vpack.c.bf16 %v55_v17, %v54_v16  ;;  %v71_v25 = vrot.slane %v62_v23, %v70_v22  ;;  %v67_v26 = vrot.slane %v62_v23, %v66_v24  ;;  %vm46_vm3 = vmand %vm44_vm1, %vm45_vm2  ;;  %s2397_s3 = smov 32  }
  0x1a   :  { %217 = vmatpush1.bf16.msra.mxu1 %v2479_v9  ;;  %139 = vmatprep.mubr.bf16.mxu0 %v2394_v0  ;;  %v2536_v35 = vsel %vm46_vm3, 1.0, %v2395_v34 }
  0x1b   :  { %318 = vmatprep.subr.bf16.mxu1 %v2456_v2  ;;  %631 = vmatpush1.bf16.msra.mxu0 %v2461_v4 }
  0x1c   :  { %632 = vmatprep.subr.bf16.mxu0 %v2474_v8 }
  0x1d   :  { %247 = vmatmul.mubr.bf16.vlgmr.msra.gmra.mrb[0].mxu1 %v2394_v0 }
  0x1e   :  { %319 = vmatpush1.bf16.msra.mxu1 %v2461_v4  ;;  %350 = vmatprep.mubr.bf16.mxu1 %v2394_v0 }
  0x1f   :  { %320 = vmatprep.subr.bf16.mxu1 %v2474_v8  ;;  %633 = vmatpush1.bf16.msra.mxu0 %v2479_v9 }
  0x20   :  { %838 = vmatprep.subr.bf16.mxu0 %v2456_v2 }
  0x21   :  { %2123 = vmatmul.mubr.msk.bf16.gmra.mrb[4].mxu0 %vm84_vm0, %v57_v12 }
  0x22   :  { %149 = vmatprep.mubr.bf16.mxu0 %v2394_v0  ;;  %321 = vmatpush1.bf16.msra.mxu1 %v2479_v9 }
  0x23   :  { %422 = vmatprep.subr.bf16.mxu1 %v2456_v2 }
  0x29   :  { %2124 = vmatmul.mubr.msk.bf16.gmra.mrb[8].mxu0 %vm84_vm0, %v58_v15 }
  0x2a   :  { %159 = vmatprep.mubr.bf16.mxu0 %v2394_v0 }
  0x31   :  { %2125 = vmatmul.mubr.msk.bf16.gmra.mrb[12].mxu0 %vm84_vm0, %v59_v18 }
  0x32   :  { %662 = vmatprep.mubr.bf16.mxu0 %v2394_v0 }
  0xec   :  { %v131_v27 = vpop.f32.mrb[0].mxu0 }
  0xed   :  { %v133_v28 = vpop.f32.mrb[1].mxu0  ;;  %v132_v31 = vadd.f32 %v131_v27, %v67_v26 }
  0xee   :  { %v2532_v29 = vadd.f32 %v133_v28, %v71_v25  ;;  %v135_v30 = vpop.f32.mrb[2].mxu0 }
  0xef   :  { %v2534_v32 = vadd.f32 %v135_v30, %v67_v26  ;;  %v137_v33 = vpop.f32.mrb[3].mxu0 }
  0xf0   :  { %v2538_v36 = vadd.f32 %v137_v33, %v71_v25  ;;  %v248_v37 = vpop.f32.mrb[0].mxu1 }
  0xf1   :  { %v257_v38 = vadd.f32 %v248_v37, %v132_v31  ;;  %v250_v39 = vpop.f32.mrb[1].mxu1 }
  0xf2   :  { %v251_v40 = vpop.f32.mrb[2].mxu1 }
  0xf3   :  { %v259_v41 = vmul.f32 %v257_v38, %v2536_v35  ;;  %v252_v42 = vpop.f32.mrb[3].mxu1 }
  0xf4   :  { %v141_v43 = vpop.f32.mrb[4].mxu0 }
  0xf5   :  { %2215 = vtanh.f32 %v259_v41  ;;  %v2541_v44 = vadd.f32 %v141_v43, %v67_v26  ;;  %v143_v45 = vpop.f32.mrb[5].mxu0 }
  0xf6   :  { %v2543_v46 = vadd.f32 %v143_v45, %v71_v25  ;;  %v145_v47 = vpop.f32.mrb[6].mxu0 }
  0xf7   :  { %v2545_v48 = vadd.f32 %v145_v47, %v67_v26  ;;  %v147_v49 = vpop.f32.mrb[7].mxu0 }
  0xf8   :  { %v2547_v50 = vadd.f32 %v147_v49, %v71_v25 }
  0xfc   :  { %v151_v51 = vpop.f32.mrb[8].mxu0 }
  0xfd   :  { %v2549_v52 = vadd.f32 %v151_v51, %v67_v26  ;;  %v153_v53 = vpop.f32.mrb[9].mxu0 }
  0xfe   :  { %v2551_v54 = vadd.f32 %v153_v53, %v71_v25  ;;  %v155_v55 = vpop.f32.mrb[10].mxu0 }
  0xff   :  { %v2216_v56 = vpop.eup %2215  ;;  %v2553_v57 = vadd.f32 %v155_v55, %v67_v26  ;;  %v157_v58 = vpop.f32.mrb[11].mxu0 }
 0x100   :  { %v2555_v59 = vadd.f32 %v157_v58, %v71_v25  ;;  %271 = vrot.lane.b32.xlu0 %v2216_v56, %s2396_s0  ;;  %v263_v12 = vadd.f32 1.0, %v2216_v56 }
 0x102   :  { %v265_v13 = vmul.f32 0.5, %v263_v12 }
 0x104   :  { %v161_v60 = vpop.f32.mrb[12].mxu0  ;;  %v267_v21 = vmul.f32 0.0, %v265_v13 }
 0x105   :  { %v2558_v61 = vadd.f32 %v161_v60, %v67_v26  ;;  %v163_v62 = vpop.f32.mrb[13].mxu0 }
 0x106   :  { %v164_v63 = vadd.f32 %v163_v62, %v71_v25  ;;  %v165_v1 = vpop.f32.mrb[14].mxu0 }
 0x107   :  { %v2560_v3 = vadd.f32 %v165_v1, %v67_v26  ;;  %v167_v5 = vpop.f32.mrb[15].mxu0 }
 0x108   :  { %v168_v6 = vadd.f32 %v167_v5, %v71_v25 }
 0x10a   :  { %v258_v7 = vadd.f32 %v252_v42, %v168_v6 }
 0x10c   :  { %v260_v10 = vmul.f32 %v258_v7, %v2536_v35 }
 0x10e   :  { %2217 = vtanh.f32 %v260_v10 }
 0x118   :  { %v2218_v11 = vpop.eup %2217 }
 0x119   :  { %273 = vrot.lane.b32.xlu0 %v2218_v11, %s2396_s0  ;;  %v264_v16 = vadd.f32 1.0, %v2218_v11 }
 0x11b   :  { %v266_v17 = vmul.f32 0.5, %v264_v16 }
 0x11d   :  { %v268_v27 = vmul.f32 0.0, %v266_v17 }
 0x172   :  { %v272_v14 = vpop.permute.xlu0 %271 }
 0x173   :  { %v277_v15 = vmul.f32 %v272_v14, %v265_v13 }
 0x175   :  { %281 = vrot.lane.b32.xlu1 %v277_v15, %s2397_s3 }
 0x18b   :  { %v274_v18 = vpop.permute.xlu0 %273 }
 0x18c   :  { %v278_v19 = vmul.f32 %v274_v18, %v266_v17 }
 0x18e   :  { %283 = vrot.lane.b32.xlu1 %v278_v19, %s2397_s3 }
 0x1e7   :  { %v282_v23 = vpop.permute.xlu1 %281 }
 0x1e8   :  { %v287_v25 = vadd.f32 %v282_v23, %v267_v21 }
 0x1ea   :  { %2219 = vtanh.f32 %v287_v25 }
 0x1f4   :  { %v2220_v26 = vpop.eup %2219 }
 0x1f5   :  { %293 = vrot.lane.b32.xlu0 %v2220_v26, %s2396_s0 }
 0x200   :  { %v284_v28 = vpop.permute.xlu1 %283 }
 0x201   :  { %v288_v30 = vadd.f32 %v284_v28, %v268_v27 }
 0x203   :  { %2221 = vtanh.f32 %v288_v30 }
 0x20d   :  { %v2222_v31 = vpop.eup %2221 }
 0x20e   :  { %295 = vrot.lane.b32.xlu1 %v2222_v31, %s2396_s0 }
 0x267   :  { %v294_v33 = vpop.permute.xlu0 %293 }
 0x268   :  { %v2568_v37 = vmul.f32 %v294_v33, %v265_v13 }
 0x280   :  { %v296_v34 = vpop.permute.xlu1 %295 }
 0x281   :  { %v2570_v38 = vmul.f32 %v296_v34, %v266_v17 }
 0x283   :  { %v311_v39 = vpack.c.bf16 %v2570_v38, %v2568_v37 }
 0x285   :  { %313 = vrot.lane.b32.xlu0 %v311_v39, %s2397_s3 }
 0x2f7   :  { %v314_v40 = vpop.permute.xlu0 %313 }
 0x2f8   :  { %2130 = vmatmul.mubr.msk.bf16.vlgmr.msra.gmra.mrb[4].mxu1 %vm210_vm4, %v314_v40 }
 0x2f9   :  { %423 = vmatpush1.bf16.msra.mxu1 %v2461_v4  ;;  %454 = vmatprep.mubr.bf16.mxu1 %v2394_v0 }
 0x2fa   :  { %424 = vmatprep.subr.bf16.mxu1 %v2474_v8 }
 0x2fd   :  { %425 = vmatpush1.bf16.msra.mxu1 %v2479_v9 }
 0x2fe   :  { %526 = vmatprep.subr.bf16.mxu1 %v2456_v2 }
 0x3cb   :  { %v352_v41 = vpop.f32.mrb[4].mxu1 }
 0x3cc   :  { %v361_v42 = vadd.f32 %v352_v41, %v2534_v32  ;;  %v354_v43 = vpop.f32.mrb[5].mxu1 }
 0x3cd   :  { %v355_v45 = vpop.f32.mrb[6].mxu1 }
 0x3ce   :  { %v363_v47 = vmul.f32 %v361_v42, %v2536_v35  ;;  %v356_v49 = vpop.f32.mrb[7].mxu1 }
 0x3cf   :  { %v362_v51 = vadd.f32 %v356_v49, %v164_v63 }
 0x3d0   :  { %2223 = vtanh.f32 %v363_v47 }
 0x3d1   :  { %v364_v53 = vmul.f32 %v362_v51, %v2536_v35 }
 0x3d3   :  { %2225 = vtanh.f32 %v364_v53 }
 0x3da   :  { %v2224_v55 = vpop.eup %2223 }
 0x3db   :  { %375 = vrot.lane.b32.xlu1 %v2224_v55, %s2396_s0  ;;  %v367_v58 = vadd.f32 1.0, %v2224_v55 }
 0x3dd   :  { %v2226_v56 = vpop.eup %2225  ;;  %v369_v62 = vmul.f32 0.5, %v367_v58 }
 0x3de   :  { %377 = vrot.lane.b32.xlu0 %v2226_v56, %s2396_s0  ;;  %v368_v60 = vadd.f32 1.0, %v2226_v56 }
 0x3df   :  { %v371_v7 = vmul.f32 %v369_v62, %v287_v25 }
 0x3e0   :  { %v370_v5 = vmul.f32 0.5, %v368_v60 }
 0x3e2   :  { %v372_v12 = vmul.f32 %v370_v5, %v288_v30 }
 0x44d   :  { %v376_v32 = vpop.permute.xlu1 %375 }
 0x44e   :  { %v381_v1 = vmul.f32 %v376_v32, %v369_v62 }
 0x450   :  { %385 = vrot.lane.b32.xlu1 %v381_v1, %s2397_s3  ;;  %v378_v6 = vpop.permute.xlu0 %377 }
 0x451   :  { %v382_v63 = vmul.f32 %v378_v6, %v370_v5 }
 0x453   :  { %387 = vrot.lane.b32.xlu0 %v382_v63, %s2397_s3 }
 0x4c2   :  { %v386_v10 = vpop.permute.xlu1 %385 }
 0x4c3   :  { %v391_v11 = vadd.f32 %v386_v10, %v371_v7 }
 0x4c5   :  { %2227 = vtanh.f32 %v391_v11  ;;  %v388_v13 = vpop.permute.xlu0 %387 }
 0x4c6   :  { %v392_v14 = vadd.f32 %v388_v13, %v372_v12 }
 0x4c8   :  { %2229 = vtanh.f32 %v392_v14 }
 0x4cf   :  { %v2228_v15 = vpop.eup %2227 }
 0x4d0   :  { %397 = vrot.lane.b32.xlu1 %v2228_v15, %s2396_s0 }
 0x4d2   :  { %v2230_v16 = vpop.eup %2229 }
 0x4d3   :  { %399 = vrot.lane.b32.xlu0 %v2230_v16, %s2396_s0 }
 0x542   :  { %v398_v17 = vpop.permute.xlu1 %397 }
 0x543   :  { %v2590_v19 = vmul.f32 %v398_v17, %v369_v62 }
 0x545   :  { %v400_v18 = vpop.permute.xlu0 %399 }
 0x546   :  { %v2592_v21 = vmul.f32 %v400_v18, %v370_v5 }
 0x548   :  { %v415_v23 = vpack.c.bf16 %v2592_v21, %v2590_v19 }
 0x54a   :  { %417 = vrot.lane.b32.xlu1 %v415_v23, %s2397_s3 }
 0x5bc   :  { %v418_v25 = vpop.permute.xlu1 %417 }
 0x5bd   :  { %2131 = vmatmul.mubr.msk.bf16.vlgmr.msra.gmra.mrb[8].mxu1 %vm210_vm4, %v418_v25 }
 0x5be   :  { %527 = vmatpush1.bf16.msra.mxu1 %v2461_v4  ;;  %558 = vmatprep.mubr.bf16.mxu1 %v2394_v0 }
 0x5bf   :  { %528 = vmatprep.subr.bf16.mxu1 %v2474_v8 }
 0x5c2   :  { %529 = vmatpush1.bf16.msra.mxu1 %v2479_v9 }
 0x5c3   :  { %734 = vmatprep.subr.bf16.mxu1 %v2456_v2 }
 0x690   :  { %v456_v26 = vpop.f32.mrb[8].mxu1 }
 0x691   :  { %v465_v27 = vadd.f32 %v456_v26, %v2541_v44  ;;  %v458_v28 = vpop.f32.mrb[9].mxu1 }
 0x692   :  { %v459_v30 = vpop.f32.mrb[10].mxu1 }
 0x693   :  { %v467_v31 = vmul.f32 %v465_v27, %v2536_v35  ;;  %v460_v33 = vpop.f32.mrb[11].mxu1 }
 0x694   :  { %v466_v34 = vadd.f32 %v460_v33, %v2555_v59 }
 0x695   :  { %2231 = vtanh.f32 %v467_v31 }
 0x696   :  { %v468_v39 = vmul.f32 %v466_v34, %v2536_v35 }
 0x698   :  { %2233 = vtanh.f32 %v468_v39 }
 0x69f   :  { %v2232_v40 = vpop.eup %2231 }
 0x6a0   :  { %479 = vrot.lane.b32.xlu0 %v2232_v40, %s2396_s0  ;;  %v471_v42 = vadd.f32 1.0, %v2232_v40 }
 0x6a2   :  { %v2234_v41 = vpop.eup %2233  ;;  %v473_v44 = vmul.f32 0.5, %v471_v42 }
 0x6a3   :  { %481 = vrot.lane.b32.xlu1 %v2234_v41, %s2396_s0  ;;  %v472_v43 = vadd.f32 1.0, %v2234_v41 }
 0x6a4   :  { %v475_v53 = vmul.f32 %v473_v44, %v391_v11 }
 0x6a5   :  { %v474_v49 = vmul.f32 0.5, %v472_v43 }
 0x6a7   :  { %v476_v58 = vmul.f32 %v474_v49, %v392_v14 }
 0x712   :  { %v480_v45 = vpop.permute.xlu0 %479 }
 0x713   :  { %v485_v47 = vmul.f32 %v480_v45, %v473_v44 }
 0x715   :  { %489 = vrot.lane.b32.xlu0 %v485_v47, %s2397_s3  ;;  %v482_v51 = vpop.permute.xlu1 %481 }
 0x716   :  { %v486_v59 = vmul.f32 %v482_v51, %v474_v49 }
 0x718   :  { %491 = vrot.lane.b32.xlu1 %v486_v59, %s2397_s3 }
 0x787   :  { %v490_v55 = vpop.permute.xlu0 %489 }
 0x788   :  { %v495_v56 = vadd.f32 %v490_v55, %v475_v53 }
 0x78a   :  { %2235 = vtanh.f32 %v495_v56  ;;  %v492_v60 = vpop.permute.xlu1 %491 }
 0x78b   :  { %v496_v62 = vadd.f32 %v492_v60, %v476_v58 }
 0x78d   :  { %2237 = vtanh.f32 %v496_v62 }
 0x794   :  { %v2236_v32 = vpop.eup %2235 }
 0x795   :  { %501 = vrot.lane.b32.xlu0 %v2236_v32, %s2396_s0 }
 0x797   :  { %v2238_v1 = vpop.eup %2237 }
 0x798   :  { %503 = vrot.lane.b32.xlu1 %v2238_v1, %s2396_s0 }
 0x807   :  { %v502_v5 = vpop.permute.xlu0 %501 }
 0x808   :  { %v2613_v63 = vmul.f32 %v502_v5, %v473_v44 }
 0x80a   :  { %v504_v6 = vpop.permute.xlu1 %503 }
 0x80b   :  { %v2615_v7 = vmul.f32 %v504_v6, %v474_v49 }
 0x80d   :  { %v519_v10 = vpack.c.bf16 %v2615_v7, %v2613_v63 }
 0x80f   :  { %521 = vrot.lane.b32.xlu0 %v519_v10, %s2397_s3 }
 0x881   :  { %v522_v11 = vpop.permute.xlu0 %521 }
 0x882   :  { %2132 = vmatmul.mubr.msk.bf16.vlgmr.msra.gmra.mrb[12].mxu1 %vm210_vm4, %v522_v11 }
 0x883   :  { %735 = vmatpush1.bf16.msra.mxu1 %v2461_v4  ;;  %766 = vmatprep.mubr.bf16.mxu1 %v2394_v0 }
 0x884   :  { %736 = vmatprep.subr.bf16.mxu1 %v2474_v8 }
 0x887   :  { %737 = vmatpush1.bf16.msra.mxu1 %v2479_v9 }
 0x888   :  { %942 = vmatprep.subr.bf16.mxu1 %v2456_v2 }
 0x955   :  { %v560_v12 = vpop.f32.mrb[12].mxu1 }
 0x956   :  { %v569_v13 = vadd.f32 %v560_v12, %v2545_v48  ;;  %v562_v14 = vpop.f32.mrb[13].mxu1 }
 0x957   :  { %v563_v15 = vpop.f32.mrb[14].mxu1 }
 0x958   :  { %v571_v16 = vmul.f32 %v569_v13, %v2536_v35  ;;  %v564_v17 = vpop.f32.mrb[15].mxu1 }
 0x959   :  { %v570_v18 = vadd.f32 %v564_v17, %v2551_v54 }
 0x95a   :  { %2239 = vtanh.f32 %v571_v16 }
 0x95b   :  { %v572_v23 = vmul.f32 %v570_v18, %v2536_v35 }
 0x95d   :  { %2241 = vtanh.f32 %v572_v23 }
 0x964   :  { %v2240_v25 = vpop.eup %2239 }
 0x965   :  { %583 = vrot.lane.b32.xlu1 %v2240_v25, %s2396_s0  ;;  %v575_v2 = vadd.f32 1.0, %v2240_v25 }
 0x967   :  { %v2242_v26 = vpop.eup %2241  ;;  %v577_v48 = vmul.f32 0.5, %v575_v2 }
 0x968   :  { %585 = vrot.lane.b32.xlu0 %v2242_v26, %s2396_s0  ;;  %v576_v27 = vadd.f32 1.0, %v2242_v26 }
 0x969   :  { %v579_v34 = vmul.f32 %v577_v48, %v495_v56 }
 0x96a   :  { %v578_v31 = vmul.f32 0.5, %v576_v27 }
 0x96c   :  { %v580_v41 = vmul.f32 %v578_v31, %v496_v62 }
 0x9d7   :  { %v584_v28 = vpop.permute.xlu1 %583 }
 0x9d8   :  { %v589_v30 = vmul.f32 %v584_v28, %v577_v48 }
 0x9da   :  { %593 = vrot.lane.b32.xlu1 %v589_v30, %s2397_s3  ;;  %v586_v33 = vpop.permute.xlu0 %585 }
 0x9db   :  { %v590_v54 = vmul.f32 %v586_v33, %v578_v31 }
 0x9dd   :  { %595 = vrot.lane.b32.xlu0 %v590_v54, %s2397_s3 }
 0xa4c   :  { %v594_v39 = vpop.permute.xlu1 %593 }
 0xa4d   :  { %v599_v40 = vadd.f32 %v594_v39, %v579_v34 }
 0xa4f   :  { %2243 = vtanh.f32 %v599_v40  ;;  %v596_v42 = vpop.permute.xlu0 %595 }
 0xa50   :  { %v600_v43 = vadd.f32 %v596_v42, %v580_v41 }
 0xa52   :  { %2245 = vtanh.f32 %v600_v43 }
 0xa59   :  { %v2244_v44 = vpop.eup %2243 }
 0xa5a   :  { %605 = vrot.lane.b32.xlu1 %v2244_v44, %s2396_s0 }
 0xa5c   :  { %v2246_v45 = vpop.eup %2245 }
 0xa5d   :  { %607 = vrot.lane.b32.xlu0 %v2246_v45, %s2396_s0 }
 0xacc   :  { %v606_v47 = vpop.permute.xlu1 %605 }
 0xacd   :  { %v2636_v51 = vmul.f32 %v606_v47, %v577_v48 }
 0xacf   :  { %v608_v49 = vpop.permute.xlu0 %607 }
 0xad0   :  { %v2638_v59 = vmul.f32 %v608_v49, %v578_v31 }
 0xad2   :  { %v623_v53 = vpack.c.bf16 %v2638_v59, %v2636_v51 }
 0xad4   :  { %625 = vrot.lane.b32.xlu1 %v623_v53, %s2397_s3 }
 0xb46   :  { %v626_v55 = vpop.permute.xlu1 %625 }
 0xb47   :  { %2133 = vmatmul.mubr.msk.bf16.vlgmr.msra.gmra.mrb[16].mxu0 %vm210_vm4, %v626_v55 }
 0xb48   :  { %839 = vmatpush1.bf16.msra.mxu0 %v2461_v4  ;;  %870 = vmatprep.mubr.bf16.mxu0 %v2394_v0 }
 0xb49   :  { %840 = vmatprep.subr.bf16.mxu0 %v2474_v8 }
 0xb4c   :  { %841 = vmatpush1.bf16.msra.mxu0 %v2479_v9 }
 0xc1a   :  { %v664_v56 = vpop.f32.mrb[16].mxu0 }
 0xc1b   :  { %v673_v58 = vadd.f32 %v664_v56, %v2549_v52  ;;  %v666_v60 = vpop.f32.mrb[17].mxu0 }
 0xc1c   :  { %v667_v62 = vpop.f32.mrb[18].mxu0 }
 0xc1d   :  { %v675_v32 = vmul.f32 %v673_v58, %v2536_v35  ;;  %v668_v1 = vpop.f32.mrb[19].mxu0 }
 0xc1e   :  { %v674_v5 = vadd.f32 %v668_v1, %v2547_v50 }
 0xc1f   :  { %2247 = vtanh.f32 %v675_v32 }
 0xc20   :  { %v676_v6 = vmul.f32 %v674_v5, %v2536_v35 }
 0xc22   :  { %2249 = vtanh.f32 %v676_v6 }
 0xc29   :  { %v2248_v10 = vpop.eup %2247 }
 0xc2a   :  { %687 = vrot.lane.b32.xlu0 %v2248_v10, %s2396_s0  ;;  %v679_v12 = vadd.f32 1.0, %v2248_v10 }
 0xc2c   :  { %v2250_v11 = vpop.eup %2249  ;;  %v681_v52 = vmul.f32 0.5, %v679_v12 }
 0xc2d   :  { %689 = vrot.lane.b32.xlu1 %v2250_v11, %s2396_s0  ;;  %v680_v13 = vadd.f32 1.0, %v2250_v11 }
 0xc2e   :  { %v683_v18 = vmul.f32 %v681_v52, %v599_v40 }
 0xc2f   :  { %v682_v16 = vmul.f32 0.5, %v680_v13 }
 0xc31   :  { %v684_v26 = vmul.f32 %v682_v16, %v600_v43 }
 0xc9c   :  { %v688_v14 = vpop.permute.xlu0 %687 }
 0xc9d   :  { %v693_v15 = vmul.f32 %v688_v14, %v681_v52 }
 0xc9f   :  { %697 = vrot.lane.b32.xlu0 %v693_v15, %s2397_s3  ;;  %v690_v17 = vpop.permute.xlu1 %689 }
 0xca0   :  { %v694_v50 = vmul.f32 %v690_v17, %v682_v16 }
 0xca2   :  { %699 = vrot.lane.b32.xlu1 %v694_v50, %s2397_s3 }
 0xd11   :  { %v698_v23 = vpop.permute.xlu0 %697 }
 0xd12   :  { %v703_v25 = vadd.f32 %v698_v23, %v683_v18 }
 0xd14   :  { %2251 = vtanh.f32 %v703_v25  ;;  %v700_v2 = vpop.permute.xlu1 %699 }
 0xd15   :  { %v704_v27 = vadd.f32 %v700_v2, %v684_v26 }
 0xd17   :  { %2253 = vtanh.f32 %v704_v27 }
 0xd1e   :  { %v2252_v48 = vpop.eup %2251 }
 0xd1f   :  { %709 = vrot.lane.b32.xlu0 %v2252_v48, %s2396_s0 }
 0xd21   :  { %v2254_v28 = vpop.eup %2253 }
 0xd22   :  { %711 = vrot.lane.b32.xlu1 %v2254_v28, %s2396_s0 }
 0xd91   :  { %v710_v30 = vpop.permute.xlu0 %709 }
 0xd92   :  { %v2658_v33 = vmul.f32 %v710_v30, %v681_v52 }
 0xd94   :  { %v712_v31 = vpop.permute.xlu1 %711 }
 0xd95   :  { %v2660_v54 = vmul.f32 %v712_v31, %v682_v16 }
 0xd97   :  { %v727_v34 = vpack.c.bf16 %v2660_v54, %v2658_v33 }
 0xd99   :  { %729 = vrot.lane.b32.xlu0 %v727_v34, %s2397_s3 }
 0xe0b   :  { %v730_v39 = vpop.permute.xlu0 %729 }
 0xe0c   :  { %2134 = vmatmul.mubr.msk.bf16.vlgmr.msra.gmra.mrb[16].mxu1 %vm210_vm4, %v730_v39 }
 0xe0d   :  { %943 = vmatpush1.bf16.msra.mxu1 %v2461_v4  ;;  %974 = vmatprep.mubr.bf16.mxu1 %v2394_v0 }
 0xe0e   :  { %944 = vmatprep.subr.bf16.mxu1 %v2474_v8 }
 0xe11   :  { %945 = vmatpush1.bf16.msra.mxu1 %v2479_v9 }
 0xedf   :  { %v768_v40 = vpop.f32.mrb[16].mxu1 }
 0xee0   :  { %v777_v41 = vadd.f32 %v768_v40, %v2553_v57  ;;  %v770_v42 = vpop.f32.mrb[17].mxu1 }
 0xee1   :  { %v771_v43 = vpop.f32.mrb[18].mxu1 }
 0xee2   :  { %v779_v44 = vmul.f32 %v777_v41, %v2536_v35  ;;  %v772_v45 = vpop.f32.mrb[19].mxu1 }
 0xee3   :  { %v778_v47 = vadd.f32 %v772_v45, %v2543_v46 }
 0xee4   :  { %2255 = vtanh.f32 %v779_v44 }
 0xee5   :  { %v780_v49 = vmul.f32 %v778_v47, %v2536_v35 }
 0xee7   :  { %2257 = vtanh.f32 %v780_v49 }
 0xeee   :  { %v2256_v4 = vpop.eup %2255 }
 0xeef   :  { %791 = vrot.lane.b32.xlu1 %v2256_v4, %s2396_s0  ;;  %v783_v9 = vadd.f32 1.0, %v2256_v4 }
 0xef1   :  { %v2258_v8 = vpop.eup %2257  ;;  %v785_v57 = vmul.f32 0.5, %v783_v9 }
 0xef2   :  { %793 = vrot.lane.b32.xlu0 %v2258_v8, %s2396_s0  ;;  %v784_v53 = vadd.f32 1.0, %v2258_v8 }
 0xef3   :  { %v787_v62 = vmul.f32 %v785_v57, %v703_v25 }
 0xef4   :  { %v786_v58 = vmul.f32 0.5, %v784_v53 }
 0xef6   :  { %v788_v5 = vmul.f32 %v786_v58, %v704_v27 }
 0xf61   :  { %v792_v55 = vpop.permute.xlu1 %791 }
 0xf62   :  { %v797_v56 = vmul.f32 %v792_v55, %v785_v57 }
 0xf64   :  { %801 = vrot.lane.b32.xlu1 %v797_v56, %s2397_s3  ;;  %v794_v60 = vpop.permute.xlu0 %793 }
 0xf65   :  { %v798_v46 = vmul.f32 %v794_v60, %v786_v58 }
 0xf67   :  { %803 = vrot.lane.b32.xlu0 %v798_v46, %s2397_s3 }
 0xfd6   :  { %v802_v32 = vpop.permute.xlu1 %801 }
 0xfd7   :  { %v807_v1 = vadd.f32 %v802_v32, %v787_v62 }
 0xfd9   :  { %2259 = vtanh.f32 %v807_v1  ;;  %v804_v6 = vpop.permute.xlu0 %803 }
 0xfda   :  { %v808_v10 = vadd.f32 %v804_v6, %v788_v5 }
 0xfdc   :  { %2261 = vtanh.f32 %v808_v10 }
 0xfe3   :  { %v2260_v11 = vpop.eup %2259 }
 0xfe4   :  { %813 = vrot.lane.b32.xlu1 %v2260_v11, %s2396_s0 }
 0xfe6   :  { %v2262_v12 = vpop.eup %2261 }
 0xfe7   :  { %815 = vrot.lane.b32.xlu0 %v2262_v12, %s2396_s0 }
0x1056   :  { %v814_v13 = vpop.permute.xlu1 %813 }
0x1057   :  { %v2680_v14 = vmul.f32 %v814_v13, %v785_v57 }
0x1059   :  { %v816_v52 = vpop.permute.xlu0 %815 }
0x105a   :  { %v2682_v15 = vmul.f32 %v816_v52, %v786_v58 }
0x105c   :  { %v831_v16 = vpack.c.bf16 %v2682_v15, %v2680_v14 }
0x105e   :  { %833 = vrot.lane.b32.xlu1 %v831_v16, %s2397_s3 }
0x10d0   :  { %v834_v17 = vpop.permute.xlu1 %833 }
0x10d1   :  { %2135 = vmatmul.mubr.msk.bf16.vlgmr.msra.gmra.mrb[20].mxu0 %vm210_vm4, %v834_v17 }
0x10d2   :  { %1135 = vmatprep.mubr.bf16.mxu0 %v2394_v0 }
0x11a4   :  { %v872_v50 = vpop.f32.mrb[20].mxu0 }
0x11a5   :  { %v881_v18 = vadd.f32 %v872_v50, %v2558_v61  ;;  %v874_v23 = vpop.f32.mrb[21].mxu0 }
0x11a6   :  { %v875_v25 = vpop.f32.mrb[22].mxu0 }
0x11a7   :  { %v883_v26 = vmul.f32 %v881_v18, %v2536_v35  ;;  %v876_v2 = vpop.f32.mrb[23].mxu0 }
0x11a8   :  { %v882_v27 = vadd.f32 %v876_v2, %v2538_v36 }
0x11a9   :  { %2263 = vtanh.f32 %v883_v26 }
0x11aa   :  { %v884_v48 = vmul.f32 %v882_v27, %v2536_v35 }
0x11ac   :  { %2265 = vtanh.f32 %v884_v48 }
0x11b3   :  { %v2264_v28 = vpop.eup %2263 }
0x11b4   :  { %895 = vrot.lane.b32.xlu0 %v2264_v28, %s2396_s0  ;;  %v887_v31 = vadd.f32 1.0, %v2264_v28 }
0x11b6   :  { %v2266_v30 = vpop.eup %2265  ;;  %v889_v61 = vmul.f32 0.5, %v887_v31 }
0x11b7   :  { %897 = vrot.lane.b32.xlu1 %v2266_v30, %s2396_s0  ;;  %v888_v34 = vadd.f32 1.0, %v2266_v30 }
0x11b8   :  { %v891_v43 = vmul.f32 %v889_v61, %v807_v1 }
0x11b9   :  { %v890_v41 = vmul.f32 0.5, %v888_v34 }
0x11bb   :  { %v892_v47 = vmul.f32 %v890_v41, %v808_v10 }
0x1226   :  { %v896_v39 = vpop.permute.xlu0 %895 }
0x1227   :  { %v901_v40 = vmul.f32 %v896_v39, %v889_v61 }
0x1229   :  { %905 = vrot.lane.b32.xlu0 %v901_v40, %s2397_s3  ;;  %v898_v42 = vpop.permute.xlu1 %897 }
0x122a   :  { %v902_v36 = vmul.f32 %v898_v42, %v890_v41 }
0x122c   :  { %907 = vrot.lane.b32.xlu1 %v902_v36, %s2397_s3 }
0x129b   :  { %v906_v44 = vpop.permute.xlu0 %905 }
0x129c   :  { %v911_v45 = vadd.f32 %v906_v44, %v891_v43 }
0x129e   :  { %2267 = vtanh.f32 %v911_v45  ;;  %v908_v49 = vpop.permute.xlu1 %907 }
0x129f   :  { %v912_v4 = vadd.f32 %v908_v49, %v892_v47 }
0x12a1   :  { %2269 = vtanh.f32 %v912_v4 }
0x12a8   :  { %v2268_v8 = vpop.eup %2267 }
0x12a9   :  { %917 = vrot.lane.b32.xlu0 %v2268_v8, %s2396_s0 }
0x12ab   :  { %v2270_v9 = vpop.eup %2269 }
0x12ac   :  { %919 = vrot.lane.b32.xlu1 %v2270_v9, %s2396_s0 }
0x131b   :  { %v918_v53 = vpop.permute.xlu0 %917 }
0x131c   :  { %v923_v55 = vmul.f32 %v918_v53, %v889_v61 }
0x131e   :  { %v920_v57 = vpop.permute.xlu1 %919 }
0x131f   :  { %v924_v56 = vmul.f32 %v920_v57, %v890_v41  ;;  %v2208_v57 = vld [vmem:[%s3003_s4 + $0x14] ss:$8 sps:$4 sm:$0xff]  }
0x1321   :  { %v935_v58 = vpack.c.bf16 %v924_v56, %v923_v55 }
0x1323   :  { %937 = vrot.lane.b32.xlu0 %v935_v58, %s2397_s3 }
0x1395   :  { %v938_v60 = vpop.permute.xlu0 %937 }
0x1396   :  { %2136 = vmatmul.mubr.msk.bf16.vlgmr.msra.gmra.mrb[20].mxu1 %vm210_vm4, %v938_v60 }
0x1397   :  { %1381 = vmatprep.mubr.bf16.mxu1 %v2394_v0 }
0x1469   :  { %v976_v46 = vpop.f32.mrb[20].mxu1 }
0x146a   :  { %v985_v62 = vadd.f32 %v976_v46, %v2560_v3  ;;  %v978_v32 = vpop.f32.mrb[21].mxu1 }
0x146b   :  { %v979_v1 = vpop.f32.mrb[22].mxu1 }
0x146c   :  { %v987_v5 = vmul.f32 %v985_v62, %v2536_v35  ;;  %v980_v6 = vpop.f32.mrb[23].mxu1 }
0x146d   :  { %v986_v10 = vadd.f32 %v980_v6, %v2532_v29 }
0x146e   :  { %2271 = vtanh.f32 %v987_v5 }
0x146f   :  { %v988_v11 = vmul.f32 %v986_v10, %v2536_v35 }
0x1471   :  { %2273 = vtanh.f32 %v988_v11 }
0x1478   :  { %v2272_v12 = vpop.eup %2271 }
0x1479   :  { %999 = vrot.lane.b32.xlu0 %v2272_v12, %s2396_s0  ;;  %v991_v52 = vadd.f32 1.0, %v2272_v12 }
0x147b   :  { %v2274_v13 = vpop.eup %2273  ;;  %v2708_v3 = vmul.f32 0.5, %v991_v52 }
0x147c   :  { %1001 = vrot.lane.b32.xlu1 %v2274_v13, %s2396_s0  ;;  %v992_v16 = vadd.f32 1.0, %v2274_v13 }
0x147d   :  { %v995_v25 = vmul.f32 %v2708_v3, %v911_v45 }
0x147e   :  { %v994_v18 = vmul.f32 0.5, %v992_v16 }
0x1480   :  { %v996_v27 = vmul.f32 %v994_v18, %v912_v4  ;;  %v2203_v4 = vld [vmem:[%s3003_s4] ss:$8 sps:$4 sm:$0xff]  }
0x14eb   :  { %v1000_v17 = vpop.permute.xlu0 %999 }
0x14ec   :  { %v1005_v50 = vmul.f32 %v1000_v17, %v2708_v3 }
0x14ee   :  { %1009 = vrot.lane.b32.xlu0 %v1005_v50, %s2397_s3  ;;  %v1002_v29 = vpop.permute.xlu1 %1001 }
0x14ef   :  { %v1006_v23 = vmul.f32 %v1002_v29, %v994_v18 }
0x14f1   :  { %1011 = vrot.lane.b32.xlu1 %v1006_v23, %s2397_s3 }
0x1560   :  { %v1010_v26 = vpop.permute.xlu0 %1009 }
0x1561   :  { %v1015_v2 = vadd.f32 %v1010_v26, %v995_v25 }
0x1563   :  { %2275 = vtanh.f32 %v1015_v2  ;;  %v1012_v48 = vpop.permute.xlu1 %1011 }
0x1564   :  { %v1016_v28 = vadd.f32 %v1012_v48, %v996_v27 }
0x1566   :  { %2277 = vtanh.f32 %v1016_v28 }
0x156d   :  { %v2276_v30 = vpop.eup %2275 }
0x156e   :  { %1021 = vrot.lane.b32.xlu0 %v2276_v30, %s2396_s0 }
0x1570   :  { %v2278_v31 = vpop.eup %2277 }
0x1571   :  { %1023 = vrot.lane.b32.xlu1 %v2278_v31, %s2396_s0 }
0x1575   :  { %931 = vrot.lane.b32.xlu1 %v924_v56, %s2397_s3  ;;  %v2206_v56 = vld [vmem:[%s3003_s4 + $0x10] ss:$8 sps:$4 sm:$0xff]  }
0x1579   :  { %723 = vrot.lane.b32.xlu1 %v2660_v54, %s2397_s3  ;;  %v2197_v54 = vld [vmem:[%s3003_s4 + $0x20] ss:$8 sps:$4 sm:$0xff]  }
0x157d   :  { %515 = vrot.lane.b32.xlu1 %v2615_v7, %s2397_s3  ;;  %v2199_v7 = vld [vmem:[%s3003_s4 + $0x24] ss:$8 sps:$4 sm:$0xff]  }
0x157e   :  { %1103 = vmatprep.subr.bf16.mxu0 %v2199_v7  ;;  %v1281_v7 = vld [vmem:[%s3005_s6] sm:$0x3]  ;;  %s2398_s6 = smov [#allocation8]  }
0x157f   :  { %1104 = vmatpush1.bf16.msra.mxu0 %v2197_v54  ;;  %s2111_s15 = sshll.u32 %s2398_s6, 4  ;;  %s2112_s15 = int_to_ptr.vmem [resolvable:$true] %s2111_s15 }
0x1580   :  { %s2365_s16 = scalar_lea.vmem %s2112_s15, 128  ;;  %p2370_p9 = scmp.lt.s32.totalorder %s2112_s15, %s2112_s15 }
0x1581   :  { %307 = vrot.lane.b32.xlu1 %v2570_v38, %s2397_s3  ;;  %v2202_v38 = vld [vmem:[%s3003_s4 + $0x34] ss:$8 sps:$4 sm:$0xff]   ;;  %p2366_p8 = scmp.ne.s32.totalorder %s2112_s15, %s2365_s16  ;;  %p2371_p10 = scmp.lt.s32.totalorder %s2365_s16, %s2365_s16 }
0x1582   :  { %1105 = vmatprep.subr.bf16.mxu0 %v2202_v38  ;;  %v1290_v38 = vrot.slane %v1281_v7, %v70_v22 }
0x1583   :  { %p2372_p11 = por %p2371_p10, %p2370_p9 }
0x1585   :  { %302 = vrot.lane.b32.xlu1 %v2568_v37, %s2397_s3  ;;  %v2200_v37 = vld [vmem:[%s3003_s4 + $0x30] ss:$8 sps:$4 sm:$0xff]   ;;  %p2373_p12 = pnand %p2372_p11, %p2366_p8 }
0x1586   :  { %1106 = vmatpush1.bf16.msra.mxu0 %v2200_v37  ;;  %v1286_v37 = vrot.slane %v1281_v7, %v66_v24 }
0x1589   :  { %510 = vrot.lane.b32.xlu1 %v2613_v63, %s2397_s3  ;;  %v2205_v63 = vld [vmem:[%s3003_s4 + $0x4] ss:$8 sps:$4 sm:$0xff]  }
0x158a   :  { %1208 = vmatprep.subr.bf16.mxu0 %v2205_v63 }
0x158d   :  { %718 = vrot.lane.b32.xlu1 %v2658_v33, %s2397_s3 }
0x1591   :  { %926 = vrot.lane.b32.xlu1 %v923_v55, %s2397_s3 }
0x15e0   :  { %v1022_v36 = vpop.permute.xlu0 %1021 }
0x15e1   :  { %v1027_v44 = vmul.f32 %v1022_v36, %v2708_v3 }
0x15e3   :  { %v1024_v33 = vpop.permute.xlu1 %1023 }
0x15e4   :  { %v1028_v34 = vmul.f32 %v1024_v33, %v994_v18 }
0x15e6   :  { %1035 = vrot.lane.b32.xlu0 %v1028_v34, %s2397_s3 }
0x15e7   :  { %v932_v61 = vpop.permute.xlu1 %931 }
0x15e8   :  { %934 = vst.msk [vmem:[#allocation4 + $0x8] sm:$0xff] %vm210_vm4, %v932_v61 }
0x15ea   :  { %827 = vrot.lane.b32.xlu0 %v2682_v15, %s2397_s3 }
0x15eb   :  { %v724_v39 = vpop.permute.xlu1 %723 }
0x15ec   :  { %726 = vst.msk [vmem:[#allocation4 + $0x18] sm:$0xff] %vm210_vm4, %v724_v39 }
0x15ee   :  { %619 = vrot.lane.b32.xlu0 %v2638_v59, %s2397_s3  ;;  %v2764_v59 = vld [vmem:[%s3004_s5 + $0x4] ss:$8 sps:$4 sm:$0xff]  }
0x15ef   :  { %v516_v40 = vpop.permute.xlu1 %515  ;;  %1349 = vmatprep.subr.bf16.mxu1 %v2764_v59  ;;  %v1056_v9 = vld [vmem:[#allocation4 + $0x8] sm:$0xff] }
0x15f0   :  { %518 = vst.msk [vmem:[#allocation4 + $0x28] sm:$0xff] %vm210_vm4, %v516_v40 }
0x15f2   :  { %411 = vrot.lane.b32.xlu0 %v2592_v21, %s2397_s3  ;;  %v2769_v21 = vld [vmem:[%s3004_s5] ss:$8 sps:$4 sm:$0xff]  }
0x15f3   :  { %v308_v41 = vpop.permute.xlu1 %307  ;;  %1350 = vmatpush1.bf16.msra.mxu1 %v2769_v21  ;;  %v1058_v46 = vld [vmem:[#allocation4 + $0x18] sm:$0xff] }
0x15f4   :  { %310 = vst.msk [vmem:[#allocation4 + $0x38] sm:$0xff] %vm210_vm4, %v308_v41 }
0x15f6   :  { %406 = vrot.lane.b32.xlu0 %v2590_v19, %s2397_s3  ;;  %v2775_v19 = vld [vmem:[%s3004_s5 + $0x14] ss:$8 sps:$4 sm:$0xff]  }
0x15f7   :  { %v303_v42 = vpop.permute.xlu1 %302  ;;  %1351 = vmatprep.subr.bf16.mxu1 %v2775_v19  ;;  %v1060_v6 = vld [vmem:[#allocation4 + $0x28] sm:$0xff] }
0x15f8   :  { %305 = vst.msk [vmem:[#allocation3] sm:$0xff] %vm210_vm4, %v303_v42 }
0x15fa   :  { %614 = vrot.lane.b32.xlu0 %v2636_v51, %s2397_s3  ;;  %v2784_v51 = vld [vmem:[%s3004_s5 + $0x10] ss:$8 sps:$4 sm:$0xff]  }
0x15fb   :  { %v511_v15 = vpop.permute.xlu1 %510  ;;  %1352 = vmatpush1.bf16.msra.mxu1 %v2784_v51  ;;  %v1062_v13 = vld [vmem:[#allocation4 + $0x38] sm:$0xff] }
0x15fc   :  { %513 = vst.msk [vmem:[#allocation3 + $0x10] sm:$0xff] %vm210_vm4, %v511_v15  ;;  %1443 = vmatprep.subr.bf16.mxu1 %v2764_v59 }
0x15fe   :  { %822 = vrot.lane.b32.xlu0 %v2680_v14, %s2397_s3  ;;  %1382 = vmatmul.mubr.bf16.vlgmr.msra.gmra.mrb[24].mxu1 %v2394_v0 }
0x15ff   :  { %v719_v43 = vpop.permute.xlu1 %718  ;;  %1444 = vmatpush1.bf16.msra.mxu1 %v2769_v21  ;;  %1475 = vmatprep.mubr.bf16.mxu1 %v2394_v0  ;;  %v1039_v3 = vld [vmem:[#allocation3] sm:$0xff] }
0x1600   :  { %721 = vst.msk [vmem:[#allocation3 + $0x20] sm:$0xff] %vm210_vm4, %v719_v43  ;;  %1445 = vmatprep.subr.bf16.mxu1 %v2775_v19 }
0x1602   :  { %1030 = vrot.lane.b32.xlu0 %v1027_v44, %s2397_s3 }
0x1603   :  { %v927_v45 = vpop.permute.xlu1 %926  ;;  %1446 = vmatpush1.bf16.msra.mxu1 %v2784_v51  ;;  %v1041_v18 = vld [vmem:[#allocation3 + $0x10] sm:$0xff] }
0x1604   :  { %929 = vst.msk [vmem:[#allocation3 + $0x30] sm:$0xff] %vm210_vm4, %v927_v45  ;;  %1537 = vmatprep.subr.bf16.mxu1 %v2764_v59 }
0x1607   :  { %v1043_v25 = vld [vmem:[#allocation3 + $0x20] sm:$0xff] }
0x160b   :  { %v1045_v27 = vld [vmem:[#allocation3 + $0x30] sm:$0xff] }
0x1658   :  { %v1036_v14 = vpop.permute.xlu0 %1035 }
0x1659   :  { %1038 = vst.msk [vmem:[#allocation4] sm:$0xff] %vm210_vm4, %v1036_v14 }
0x165c   :  { %v828_v47 = vpop.permute.xlu0 %827 }
0x165d   :  { %830 = vst.msk [vmem:[#allocation4 + $0x10] sm:$0xff] %vm210_vm4, %v828_v47 }
0x1660   :  { %v620_v49 = vpop.permute.xlu0 %619  ;;  %v1055_v8 = vld [vmem:[#allocation4] sm:$0xff] }
0x1661   :  { %622 = vst.msk [vmem:[#allocation4 + $0x20] sm:$0xff] %vm210_vm4, %v620_v49  ;;  %v1063_v53 = vpack.c.bf16 %v1056_v9, %v1055_v8 }
0x1663   :  { %2141 = vmatmul.mubr.msk.bf16.vlgmr.msra.gmra.mrb[24].mxu0 %vm210_vm4, %v1063_v53 }
0x1664   :  { %1209 = vmatpush1.bf16.msra.mxu0 %v2203_v4  ;;  %v412_v55 = vpop.permute.xlu0 %411  ;;  %1145 = vmatprep.mubr.bf16.mxu0 %v2394_v0  ;;  %v1057_v58 = vld [vmem:[#allocation4 + $0x10] sm:$0xff] }
0x1665   :  { %414 = vst.msk [vmem:[#allocation4 + $0x30] sm:$0xff] %vm210_vm4, %v412_v55  ;;  %1210 = vmatprep.subr.bf16.mxu0 %v2208_v57  ;;  %v1064_v62 = vpack.c.bf16 %v1058_v46, %v1057_v58 }
0x1668   :  { %v407_v60 = vpop.permute.xlu0 %406  ;;  %1211 = vmatpush1.bf16.msra.mxu0 %v2206_v56  ;;  %v1059_v1 = vld [vmem:[#allocation4 + $0x20] sm:$0xff] }
0x1669   :  { %409 = vst.msk [vmem:[#allocation3 + $0x8] sm:$0xff] %vm210_vm4, %v407_v60  ;;  %v1065_v10 = vpack.c.bf16 %v1060_v6, %v1059_v1 }
0x166b   :  { %2142 = vmatmul.mubr.msk.bf16.gmra.mrb[28].mxu0 %vm210_vm4, %v1064_v62 }
0x166c   :  { %v615_v32 = vpop.permute.xlu0 %614  ;;  %1155 = vmatprep.mubr.bf16.mxu0 %v2394_v0  ;;  %v1061_v12 = vld [vmem:[#allocation4 + $0x30] sm:$0xff] }
0x166d   :  { %617 = vst.msk [vmem:[#allocation3 + $0x18] sm:$0xff] %vm210_vm4, %v615_v32  ;;  %v1066_v52 = vpack.c.bf16 %v1062_v13, %v1061_v12 }
0x1670   :  { %v823_v5 = vpop.permute.xlu0 %822  ;;  %v1040_v16 = vld [vmem:[#allocation3 + $0x8] sm:$0xff] }
0x1671   :  { %825 = vst.msk [vmem:[#allocation3 + $0x28] sm:$0xff] %vm210_vm4, %v823_v5  ;;  %v1047_v17 = vpack.c.bf16 %v1040_v16, %v1039_v3 }
0x1673   :  { %2143 = vmatmul.mubr.msk.bf16.gmra.mrb[32].mxu0 %vm210_vm4, %v1065_v10 }
0x1674   :  { %v1031_v11 = vpop.permute.xlu0 %1030  ;;  %1165 = vmatprep.mubr.bf16.mxu0 %v2394_v0  ;;  %v1042_v50 = vld [vmem:[#allocation3 + $0x18] sm:$0xff] }
0x1675   :  { %1033 = vst.msk [vmem:[#allocation3 + $0x38] sm:$0xff] %vm210_vm4, %v1031_v11  ;;  %v1048_v29 = vpack.c.bf16 %v1042_v50, %v1041_v18 }
0x1678   :  { %v1044_v23 = vld [vmem:[#allocation3 + $0x28] sm:$0xff] }
0x1679   :  { %v1049_v26 = vpack.c.bf16 %v1044_v23, %v1043_v25 }
0x167b   :  { %2144 = vmatmul.mubr.msk.bf16.gmra.mrb[36].mxu0 %vm210_vm4, %v1066_v52 }
0x167c   :  { %1240 = vmatprep.mubr.bf16.mxu0 %v2394_v0  ;;  %v1046_v2 = vld [vmem:[#allocation3 + $0x38] sm:$0xff] }
0x167d   :  { %v1050_v48 = vpack.c.bf16 %v1046_v2, %v1045_v27 }
0x1683   :  { %2149 = vmatmul.mubr.msk.bf16.vlgmr.msra.gmra.mrb[24].mxu0 %vm210_vm4, %v1047_v17 }
0x1684   :  { %1250 = vmatprep.mubr.bf16.mxu0 %v2394_v0 }
0x168b   :  { %2150 = vmatmul.mubr.msk.bf16.gmra.mrb[28].mxu0 %vm210_vm4, %v1048_v29 }
0x168c   :  { %1260 = vmatprep.mubr.bf16.mxu0 %v2394_v0 }
0x1693   :  { %2151 = vmatmul.mubr.msk.bf16.gmra.mrb[32].mxu0 %vm210_vm4, %v1049_v26 }
0x1694   :  { %1270 = vmatprep.mubr.bf16.mxu0 %v2394_v0 }
0x169b   :  { %2152 = vmatmul.mubr.msk.bf16.gmra.mrb[36].mxu0 %vm210_vm4, %v1050_v48 }
0x16d1   :  { %v1383_v28 = vpop.f32.mrb[24].mxu1 }
0x16d2   :  { %v1385_v30 = vpop.f32.mrb[25].mxu1 }
0x16d3   :  { %v1386_v31 = vpop.f32.mrb[26].mxu1 }
0x16d4   :  { %v1387_v54 = vpop.f32.mrb[27].mxu1 }
0x1756   :  { %v1242_v63 = vpop.f32.mrb[24].mxu0 }
0x1757   :  { %v1293_v33 = vadd.f32 %v1286_v37, %v1242_v63  ;;  %v1244_v34 = vpop.f32.mrb[25].mxu0 }
0x1758   :  { %v2838_v61 = vadd.f32 %v1290_v38, %v1244_v34  ;;  %v1246_v39 = vpop.f32.mrb[26].mxu0 }
0x1759   :  { %v2840_v40 = vadd.f32 %v1286_v37, %v1246_v39  ;;  %v1392_v41 = vadd.f32 %v1383_v28, %v1293_v33  ;;  %v1248_v42 = vpop.f32.mrb[27].mxu0 }
0x175a   :  { %v2842_v15 = vadd.f32 %v1290_v38, %v1248_v42 }
0x175b   :  { %v1394_v36 = vmul.f32 %v1392_v41, %v2536_v35 }
0x175d   :  { %2279 = vtanh.f32 %v1394_v36 }
0x175e   :  { %v1252_v43 = vpop.f32.mrb[28].mxu0 }
0x175f   :  { %v2845_v24 = vadd.f32 %v1286_v37, %v1252_v43  ;;  %v1254_v20 = vpop.f32.mrb[29].mxu0 }
0x1760   :  { %v2847_v22 = vadd.f32 %v1290_v38, %v1254_v20  ;;  %v1256_v44 = vpop.f32.mrb[30].mxu0 }
0x1761   :  { %v2849_v45 = vadd.f32 %v1286_v37, %v1256_v44  ;;  %v1258_v14 = vpop.f32.mrb[31].mxu0 }
0x1762   :  { %v2851_v47 = vadd.f32 %v1290_v38, %v1258_v14 }
0x1766   :  { %v1262_v49 = vpop.f32.mrb[32].mxu0 }
0x1767   :  { %v2280_v4 = vpop.eup %2279  ;;  %v2853_v8 = vadd.f32 %v1286_v37, %v1262_v49  ;;  %v1264_v9 = vpop.f32.mrb[33].mxu0 }
0x1768   :  { %v2855_v53 = vadd.f32 %v1290_v38, %v1264_v9  ;;  %1406 = vrot.lane.b32.xlu1 %v2280_v4, %s2396_s0  ;;  %v1266_v57 = vpop.f32.mrb[34].mxu0  ;;  %v1398_v52 = vadd.f32 1.0, %v2280_v4 }
0x1769   :  { %v2858_v55 = vadd.f32 %v1286_v37, %v1266_v57  ;;  %v1268_v56 = vpop.f32.mrb[35].mxu0 }
0x176a   :  { %v2860_v58 = vadd.f32 %v1290_v38, %v1268_v56  ;;  %v1400_v16 = vmul.f32 0.5, %v1398_v52 }
0x176c   :  { %v1402_v25 = vmul.f32 0.0, %v1400_v16 }
0x176e   :  { %v1272_v60 = vpop.f32.mrb[36].mxu0 }
0x176f   :  { %v2862_v46 = vadd.f32 %v1286_v37, %v1272_v60  ;;  %v1274_v62 = vpop.f32.mrb[37].mxu0 }
0x1770   :  { %v1306_v32 = vadd.f32 %v1290_v38, %v1274_v62  ;;  %v1276_v1 = vpop.f32.mrb[38].mxu0 }
0x1771   :  { %v2864_v5 = vadd.f32 %v1286_v37, %v1276_v1  ;;  %v1278_v6 = vpop.f32.mrb[39].mxu0 }
0x1772   :  { %v1308_v10 = vadd.f32 %v1290_v38, %v1278_v6 }
0x1774   :  { %v1393_v11 = vadd.f32 %v1387_v54, %v1308_v10 }
0x1776   :  { %v1395_v12 = vmul.f32 %v1393_v11, %v2536_v35 }
0x1778   :  { %2281 = vtanh.f32 %v1395_v12 }
0x1782   :  { %v2282_v13 = vpop.eup %2281 }
0x1783   :  { %1408 = vrot.lane.b32.xlu0 %v2282_v13, %s2396_s0  ;;  %v1399_v50 = vadd.f32 1.0, %v2282_v13 }
0x1785   :  { %v1401_v18 = vmul.f32 0.5, %v1399_v50 }
0x1787   :  { %v1403_v48 = vmul.f32 0.0, %v1401_v18 }
0x17da   :  { %v1407_v3 = vpop.permute.xlu1 %1406 }
0x17db   :  { %v1412_v17 = vmul.f32 %v1407_v3, %v1400_v16 }
0x17dd   :  { %1416 = vrot.lane.b32.xlu1 %v1412_v17, %s2397_s3 }
0x17f5   :  { %v1409_v29 = vpop.permute.xlu0 %1408 }
0x17f6   :  { %v1413_v23 = vmul.f32 %v1409_v29, %v1401_v18 }
0x17f8   :  { %1418 = vrot.lane.b32.xlu0 %v1413_v23, %s2397_s3 }
0x184f   :  { %v1417_v26 = vpop.permute.xlu1 %1416 }
0x1850   :  { %v1422_v2 = vadd.f32 %v1417_v26, %v1402_v25 }
0x1852   :  { %2283 = vtanh.f32 %v1422_v2 }
0x185c   :  { %v2284_v27 = vpop.eup %2283 }
0x185d   :  { %1428 = vrot.lane.b32.xlu1 %v2284_v27, %s2396_s0 }
0x186a   :  { %v1419_v28 = vpop.permute.xlu0 %1418 }
0x186b   :  { %v1423_v30 = vadd.f32 %v1419_v28, %v1403_v48 }
0x186d   :  { %2285 = vtanh.f32 %v1423_v30 }
0x1877   :  { %v2286_v31 = vpop.eup %2285 }
0x1878   :  { %1430 = vrot.lane.b32.xlu0 %v2286_v31, %s2396_s0 }
0x18cf   :  { %v1429_v54 = vpop.permute.xlu1 %1428 }
0x18d0   :  { %v1434_v37 = vmul.f32 %v1429_v54, %v1400_v16 }
0x18ea   :  { %v1431_v7 = vpop.permute.xlu0 %1430 }
0x18eb   :  { %v1435_v38 = vmul.f32 %v1431_v7, %v1401_v18 }
0x18ed   :  { %v1436_v63 = vpack.c.bf16 %v1435_v38, %v1434_v37 }
0x18ef   :  { %1438 = vrot.lane.b32.xlu1 %v1436_v63, %s2397_s3 }
0x1961   :  { %v1439_v33 = vpop.permute.xlu1 %1438 }
0x1962   :  { %2157 = vmatmul.mubr.msk.bf16.vlgmr.msra.gmra.mrb[28].mxu1 %vm210_vm4, %v1439_v33 }
0x1963   :  { %1538 = vmatpush1.bf16.msra.mxu1 %v2769_v21  ;;  %1569 = vmatprep.mubr.bf16.mxu1 %v2394_v0 }
0x1964   :  { %1539 = vmatprep.subr.bf16.mxu1 %v2775_v19 }
0x1967   :  { %1540 = vmatpush1.bf16.msra.mxu1 %v2784_v51 }
0x1968   :  { %1631 = vmatprep.subr.bf16.mxu1 %v2764_v59 }
0x1a35   :  { %v1477_v34 = vpop.f32.mrb[28].mxu1 }
0x1a36   :  { %v1486_v39 = vadd.f32 %v1477_v34, %v2840_v40  ;;  %v1479_v41 = vpop.f32.mrb[29].mxu1 }
0x1a37   :  { %v1480_v42 = vpop.f32.mrb[30].mxu1 }
0x1a38   :  { %v1488_v36 = vmul.f32 %v1486_v39, %v2536_v35  ;;  %v1481_v43 = vpop.f32.mrb[31].mxu1 }
0x1a39   :  { %v1487_v20 = vadd.f32 %v1481_v43, %v1306_v32 }
0x1a3a   :  { %2287 = vtanh.f32 %v1488_v36 }
0x1a3b   :  { %v1489_v44 = vmul.f32 %v1487_v20, %v2536_v35 }
0x1a3d   :  { %2289 = vtanh.f32 %v1489_v44 }
0x1a44   :  { %v2288_v14 = vpop.eup %2287 }
0x1a45   :  { %1500 = vrot.lane.b32.xlu0 %v2288_v14, %s2396_s0  ;;  %v1492_v4 = vadd.f32 1.0, %v2288_v14 }
0x1a47   :  { %v2290_v49 = vpop.eup %2289  ;;  %v1494_v57 = vmul.f32 0.5, %v1492_v4 }
0x1a48   :  { %1502 = vrot.lane.b32.xlu1 %v2290_v49, %s2396_s0  ;;  %v1493_v9 = vadd.f32 1.0, %v2290_v49 }
0x1a49   :  { %v1496_v1 = vmul.f32 %v1494_v57, %v1422_v2 }
0x1a4a   :  { %v1495_v60 = vmul.f32 0.5, %v1493_v9 }
0x1a4c   :  { %v1497_v11 = vmul.f32 %v1495_v60, %v1423_v30 }
0x1ab7   :  { %v1501_v40 = vpop.permute.xlu0 %1500 }
0x1ab8   :  { %v1506_v56 = vmul.f32 %v1501_v40, %v1494_v57 }
0x1aba   :  { %1510 = vrot.lane.b32.xlu0 %v1506_v56, %s2397_s3  ;;  %v1503_v62 = vpop.permute.xlu1 %1502 }
0x1abb   :  { %v1507_v32 = vmul.f32 %v1503_v62, %v1495_v60 }
0x1abd   :  { %1512 = vrot.lane.b32.xlu1 %v1507_v32, %s2397_s3 }
0x1b2c   :  { %v1511_v6 = vpop.permute.xlu0 %1510 }
0x1b2d   :  { %v1516_v10 = vadd.f32 %v1511_v6, %v1496_v1 }
0x1b2f   :  { %2291 = vtanh.f32 %v1516_v10  ;;  %v1513_v12 = vpop.permute.xlu1 %1512 }
0x1b30   :  { %v1517_v13 = vadd.f32 %v1513_v12, %v1497_v11 }
0x1b32   :  { %2293 = vtanh.f32 %v1517_v13 }
0x1b39   :  { %v2292_v52 = vpop.eup %2291 }
0x1b3a   :  { %1522 = vrot.lane.b32.xlu0 %v2292_v52, %s2396_s0 }
0x1b3c   :  { %v2294_v16 = vpop.eup %2293 }
0x1b3d   :  { %1524 = vrot.lane.b32.xlu1 %v2294_v16, %s2396_s0 }
0x1bac   :  { %v1523_v3 = vpop.permute.xlu0 %1522 }
0x1bad   :  { %v1528_v50 = vmul.f32 %v1523_v3, %v1494_v57 }
0x1baf   :  { %v1525_v17 = vpop.permute.xlu1 %1524 }
0x1bb0   :  { %v1529_v18 = vmul.f32 %v1525_v17, %v1495_v60 }
0x1bb2   :  { %v1530_v29 = vpack.c.bf16 %v1529_v18, %v1528_v50 }
0x1bb4   :  { %1532 = vrot.lane.b32.xlu0 %v1530_v29, %s2397_s3 }
0x1c26   :  { %v1533_v23 = vpop.permute.xlu0 %1532 }
0x1c27   :  { %2158 = vmatmul.mubr.msk.bf16.vlgmr.msra.gmra.mrb[32].mxu1 %vm210_vm4, %v1533_v23 }
0x1c28   :  { %1632 = vmatpush1.bf16.msra.mxu1 %v2769_v21  ;;  %1663 = vmatprep.mubr.bf16.mxu1 %v2394_v0 }
0x1c29   :  { %1633 = vmatprep.subr.bf16.mxu1 %v2775_v19 }
0x1c2c   :  { %1634 = vmatpush1.bf16.msra.mxu1 %v2784_v51 }
0x1c2d   :  { %1725 = vmatprep.subr.bf16.mxu1 %v2764_v59 }
0x1cfa   :  { %v1571_v25 = vpop.f32.mrb[32].mxu1 }
0x1cfb   :  { %v1580_v26 = vadd.f32 %v1571_v25, %v2845_v24  ;;  %v1573_v2 = vpop.f32.mrb[33].mxu1 }
0x1cfc   :  { %v1574_v27 = vpop.f32.mrb[34].mxu1 }
0x1cfd   :  { %v1582_v48 = vmul.f32 %v1580_v26, %v2536_v35  ;;  %v1575_v28 = vpop.f32.mrb[35].mxu1 }
0x1cfe   :  { %v1581_v30 = vadd.f32 %v1575_v28, %v2860_v58 }
0x1cff   :  { %2295 = vtanh.f32 %v1582_v48 }
0x1d00   :  { %v1583_v31 = vmul.f32 %v1581_v30, %v2536_v35 }
0x1d02   :  { %2297 = vtanh.f32 %v1583_v31 }
0x1d09   :  { %v2296_v54 = vpop.eup %2295 }
0x1d0a   :  { %1594 = vrot.lane.b32.xlu1 %v2296_v54, %s2396_s0  ;;  %v1586_v37 = vadd.f32 1.0, %v2296_v54 }
0x1d0c   :  { %v2298_v7 = vpop.eup %2297  ;;  %v1588_v24 = vmul.f32 0.5, %v1586_v37 }
0x1d0d   :  { %1596 = vrot.lane.b32.xlu0 %v2298_v7, %s2396_s0  ;;  %v1587_v38 = vadd.f32 1.0, %v2298_v7 }
0x1d0e   :  { %v1590_v41 = vmul.f32 %v1588_v24, %v1516_v10 }
0x1d0f   :  { %v1589_v34 = vmul.f32 0.5, %v1587_v38 }
0x1d11   :  { %v1591_v43 = vmul.f32 %v1589_v34, %v1517_v13 }
0x1d7c   :  { %v1595_v63 = vpop.permute.xlu1 %1594 }
0x1d7d   :  { %v1600_v33 = vmul.f32 %v1595_v63, %v1588_v24 }
0x1d7f   :  { %1604 = vrot.lane.b32.xlu1 %v1600_v33, %s2397_s3  ;;  %v1597_v39 = vpop.permute.xlu0 %1596 }
0x1d80   :  { %v1601_v58 = vmul.f32 %v1597_v39, %v1589_v34 }
0x1d82   :  { %1606 = vrot.lane.b32.xlu0 %v1601_v58, %s2397_s3 }
0x1df1   :  { %v1605_v42 = vpop.permute.xlu1 %1604 }
0x1df2   :  { %v1610_v36 = vadd.f32 %v1605_v42, %v1590_v41 }
0x1df4   :  { %2299 = vtanh.f32 %v1610_v36  ;;  %v1607_v20 = vpop.permute.xlu0 %1606 }
0x1df5   :  { %v1611_v44 = vadd.f32 %v1607_v20, %v1591_v43 }
0x1df7   :  { %2301 = vtanh.f32 %v1611_v44 }
0x1dfe   :  { %v2300_v14 = vpop.eup %2299 }
0x1dff   :  { %1616 = vrot.lane.b32.xlu1 %v2300_v14, %s2396_s0 }
0x1e01   :  { %v2302_v49 = vpop.eup %2301 }
0x1e02   :  { %1618 = vrot.lane.b32.xlu0 %v2302_v49, %s2396_s0 }
0x1e71   :  { %v1617_v4 = vpop.permute.xlu1 %1616 }
0x1e72   :  { %v1622_v57 = vmul.f32 %v1617_v4, %v1588_v24 }
0x1e74   :  { %v1619_v9 = vpop.permute.xlu0 %1618 }
0x1e75   :  { %v1623_v40 = vmul.f32 %v1619_v9, %v1589_v34 }
0x1e77   :  { %v1624_v56 = vpack.c.bf16 %v1623_v40, %v1622_v57 }
0x1e79   :  { %1626 = vrot.lane.b32.xlu1 %v1624_v56, %s2397_s3 }
0x1eeb   :  { %v1627_v60 = vpop.permute.xlu1 %1626 }
0x1eec   :  { %2159 = vmatmul.mubr.msk.bf16.vlgmr.msra.gmra.mrb[36].mxu1 %vm210_vm4, %v1627_v60 }
0x1eed   :  { %1726 = vmatpush1.bf16.msra.mxu1 %v2769_v21  ;;  %1757 = vmatprep.mubr.bf16.mxu1 %v2394_v0 }
0x1eee   :  { %1727 = vmatprep.subr.bf16.mxu1 %v2775_v19 }
0x1ef1   :  { %1728 = vmatpush1.bf16.msra.mxu1 %v2784_v51 }
0x1ef2   :  { %1819 = vmatprep.subr.bf16.mxu1 %v2764_v59 }
0x1fbf   :  { %v1665_v62 = vpop.f32.mrb[36].mxu1 }
0x1fc0   :  { %v1674_v32 = vadd.f32 %v1665_v62, %v2849_v45  ;;  %v1667_v1 = vpop.f32.mrb[37].mxu1 }
0x1fc1   :  { %v1668_v6 = vpop.f32.mrb[38].mxu1 }
0x1fc2   :  { %v1676_v10 = vmul.f32 %v1674_v32, %v2536_v35  ;;  %v1669_v11 = vpop.f32.mrb[39].mxu1 }
0x1fc3   :  { %v1675_v12 = vadd.f32 %v1669_v11, %v2855_v53 }
0x1fc4   :  { %2303 = vtanh.f32 %v1676_v10 }
0x1fc5   :  { %v1677_v13 = vmul.f32 %v1675_v12, %v2536_v35 }
0x1fc7   :  { %2305 = vtanh.f32 %v1677_v13 }
0x1fce   :  { %v2304_v52 = vpop.eup %2303 }
0x1fcf   :  { %1688 = vrot.lane.b32.xlu0 %v2304_v52, %s2396_s0  ;;  %v1680_v3 = vadd.f32 1.0, %v2304_v52 }
0x1fd1   :  { %v2306_v16 = vpop.eup %2305  ;;  %v1682_v45 = vmul.f32 0.5, %v1680_v3 }
0x1fd2   :  { %1690 = vrot.lane.b32.xlu1 %v2306_v16, %s2396_s0  ;;  %v1681_v17 = vadd.f32 1.0, %v2306_v16 }
0x1fd3   :  { %v1684_v25 = vmul.f32 %v1682_v45, %v1610_v36 }
0x1fd4   :  { %v1683_v29 = vmul.f32 0.5, %v1681_v17 }
0x1fd6   :  { %v1685_v27 = vmul.f32 %v1683_v29, %v1611_v44 }
0x2041   :  { %v1689_v50 = vpop.permute.xlu0 %1688 }
0x2042   :  { %v1694_v18 = vmul.f32 %v1689_v50, %v1682_v45 }
0x2044   :  { %1698 = vrot.lane.b32.xlu0 %v1694_v18, %s2397_s3  ;;  %v1691_v23 = vpop.permute.xlu1 %1690 }
0x2045   :  { %v1695_v53 = vmul.f32 %v1691_v23, %v1683_v29 }
0x2047   :  { %1700 = vrot.lane.b32.xlu1 %v1695_v53, %s2397_s3 }
0x20b6   :  { %v1699_v26 = vpop.permute.xlu0 %1698 }
0x20b7   :  { %v1704_v2 = vadd.f32 %v1699_v26, %v1684_v25 }
0x20b9   :  { %2307 = vtanh.f32 %v1704_v2  ;;  %v1701_v48 = vpop.permute.xlu1 %1700 }
0x20ba   :  { %v1705_v28 = vadd.f32 %v1701_v48, %v1685_v27 }
0x20bc   :  { %2309 = vtanh.f32 %v1705_v28 }
0x20c3   :  { %v2308_v30 = vpop.eup %2307 }
0x20c4   :  { %1710 = vrot.lane.b32.xlu0 %v2308_v30, %s2396_s0 }
0x20c6   :  { %v2310_v31 = vpop.eup %2309 }
0x20c7   :  { %1712 = vrot.lane.b32.xlu1 %v2310_v31, %s2396_s0 }
0x2136   :  { %v1711_v54 = vpop.permute.xlu0 %1710 }
0x2137   :  { %v1716_v37 = vmul.f32 %v1711_v54, %v1682_v45 }
0x2139   :  { %v1713_v7 = vpop.permute.xlu1 %1712 }
0x213a   :  { %v1717_v38 = vmul.f32 %v1713_v7, %v1683_v29 }
0x213c   :  { %v1718_v24 = vpack.c.bf16 %v1717_v38, %v1716_v37 }
0x213e   :  { %1720 = vrot.lane.b32.xlu0 %v1718_v24, %s2397_s3 }
0x21b0   :  { %v1721_v63 = vpop.permute.xlu0 %1720 }
0x21b1   :  { %2160 = vmatmul.mubr.msk.bf16.vlgmr.msra.gmra.mrb[40].mxu1 %vm210_vm4, %v1721_v63 }
0x21b2   :  { %1820 = vmatpush1.bf16.msra.mxu1 %v2769_v21  ;;  %1851 = vmatprep.mubr.bf16.mxu1 %v2394_v0 }
0x21b3   :  { %1821 = vmatprep.subr.bf16.mxu1 %v2775_v19 }
0x21b6   :  { %1822 = vmatpush1.bf16.msra.mxu1 %v2784_v51 }
0x21b7   :  { %1913 = vmatprep.subr.bf16.mxu1 %v2764_v59 }
0x2284   :  { %v1759_v33 = vpop.f32.mrb[40].mxu1 }
0x2285   :  { %v1768_v34 = vadd.f32 %v1759_v33, %v2853_v8  ;;  %v1761_v39 = vpop.f32.mrb[41].mxu1 }
0x2286   :  { %v1762_v58 = vpop.f32.mrb[42].mxu1 }
0x2287   :  { %v1770_v41 = vmul.f32 %v1768_v34, %v2536_v35  ;;  %v1763_v42 = vpop.f32.mrb[43].mxu1 }
0x2288   :  { %v1769_v36 = vadd.f32 %v1763_v42, %v2851_v47 }
0x2289   :  { %2311 = vtanh.f32 %v1770_v41 }
0x228a   :  { %v1771_v43 = vmul.f32 %v1769_v36, %v2536_v35 }
0x228c   :  { %2313 = vtanh.f32 %v1771_v43 }
0x2293   :  { %v2312_v20 = vpop.eup %2311 }
0x2294   :  { %1782 = vrot.lane.b32.xlu1 %v2312_v20, %s2396_s0  ;;  %v1774_v14 = vadd.f32 1.0, %v2312_v20 }
0x2296   :  { %v2314_v44 = vpop.eup %2313  ;;  %v1776_v8 = vmul.f32 0.5, %v1774_v14 }
0x2297   :  { %1784 = vrot.lane.b32.xlu0 %v2314_v44, %s2396_s0  ;;  %v1775_v49 = vadd.f32 1.0, %v2314_v44 }
0x2298   :  { %v1778_v56 = vmul.f32 %v1776_v8, %v1704_v2 }
0x2299   :  { %v1777_v57 = vmul.f32 0.5, %v1775_v49 }
0x229b   :  { %v1779_v32 = vmul.f32 %v1777_v57, %v1705_v28 }
0x2306   :  { %v1783_v4 = vpop.permute.xlu1 %1782 }
0x2307   :  { %v1788_v9 = vmul.f32 %v1783_v4, %v1776_v8 }
0x2309   :  { %1792 = vrot.lane.b32.xlu1 %v1788_v9, %s2397_s3  ;;  %v1785_v40 = vpop.permute.xlu0 %1784 }
0x230a   :  { %v1789_v47 = vmul.f32 %v1785_v40, %v1777_v57 }
0x230c   :  { %1794 = vrot.lane.b32.xlu0 %v1789_v47, %s2397_s3 }
0x237b   :  { %v1793_v60 = vpop.permute.xlu1 %1792 }
0x237c   :  { %v1798_v62 = vadd.f32 %v1793_v60, %v1778_v56 }
0x237e   :  { %2315 = vtanh.f32 %v1798_v62  ;;  %v1795_v1 = vpop.permute.xlu0 %1794 }
0x237f   :  { %v1799_v6 = vadd.f32 %v1795_v1, %v1779_v32 }
0x2381   :  { %2317 = vtanh.f32 %v1799_v6 }
0x2388   :  { %v2316_v10 = vpop.eup %2315 }
0x2389   :  { %1804 = vrot.lane.b32.xlu1 %v2316_v10, %s2396_s0 }
0x238b   :  { %v2318_v11 = vpop.eup %2317 }
0x238c   :  { %1806 = vrot.lane.b32.xlu0 %v2318_v11, %s2396_s0 }
0x23fb   :  { %v1805_v12 = vpop.permute.xlu1 %1804 }
0x23fc   :  { %v1810_v52 = vmul.f32 %v1805_v12, %v1776_v8 }
0x23fe   :  { %v1807_v13 = vpop.permute.xlu0 %1806 }
0x23ff   :  { %v1811_v16 = vmul.f32 %v1807_v13, %v1777_v57 }
0x2401   :  { %v1812_v3 = vpack.c.bf16 %v1811_v16, %v1810_v52 }
0x2403   :  { %1814 = vrot.lane.b32.xlu1 %v1812_v3, %s2397_s3 }
0x2475   :  { %v1815_v17 = vpop.permute.xlu1 %1814 }
0x2476   :  { %2161 = vmatmul.mubr.msk.bf16.vlgmr.msra.gmra.mrb[44].mxu1 %vm210_vm4, %v1815_v17 }
0x2477   :  { %1914 = vmatpush1.bf16.msra.mxu1 %v2769_v21  ;;  %1945 = vmatprep.mubr.bf16.mxu1 %v2394_v0 }
0x2478   :  { %1915 = vmatprep.subr.bf16.mxu1 %v2775_v19 }
0x247b   :  { %1916 = vmatpush1.bf16.msra.mxu1 %v2784_v51 }
0x247c   :  { %2007 = vmatprep.subr.bf16.mxu1 %v2764_v59 }
0x2549   :  { %v1853_v45 = vpop.f32.mrb[44].mxu1 }
0x254a   :  { %v1862_v50 = vadd.f32 %v1853_v45, %v2858_v55  ;;  %v1855_v18 = vpop.f32.mrb[45].mxu1 }
0x254b   :  { %v1856_v29 = vpop.f32.mrb[46].mxu1 }
0x254c   :  { %v1864_v23 = vmul.f32 %v1862_v50, %v2536_v35  ;;  %v1857_v53 = vpop.f32.mrb[47].mxu1 }
0x254d   :  { %v1863_v25 = vadd.f32 %v1857_v53, %v2847_v22 }
0x254e   :  { %2319 = vtanh.f32 %v1864_v23 }
0x254f   :  { %v1865_v26 = vmul.f32 %v1863_v25, %v2536_v35 }
0x2551   :  { %2321 = vtanh.f32 %v1865_v26 }
0x2558   :  { %v2320_v2 = vpop.eup %2319 }
0x2559   :  { %1876 = vrot.lane.b32.xlu0 %v2320_v2, %s2396_s0  ;;  %v1868_v59 = vadd.f32 1.0, %v2320_v2 }
0x255b   :  { %v2322_v27 = vpop.eup %2321  ;;  %v1870_v55 = vmul.f32 0.5, %v1868_v59 }
0x255c   :  { %1878 = vrot.lane.b32.xlu1 %v2322_v27, %s2396_s0  ;;  %v1869_v48 = vadd.f32 1.0, %v2322_v27 }
0x255d   :  { %v1872_v7 = vmul.f32 %v1870_v55, %v1798_v62 }
0x255e   :  { %v1871_v31 = vmul.f32 0.5, %v1869_v48 }
0x2560   :  { %v1873_v24 = vmul.f32 %v1871_v31, %v1799_v6 }
0x25cb   :  { %v1877_v28 = vpop.permute.xlu0 %1876 }
0x25cc   :  { %v1882_v30 = vmul.f32 %v1877_v28, %v1870_v55 }
0x25ce   :  { %1886 = vrot.lane.b32.xlu0 %v1882_v30, %s2397_s3  ;;  %v1879_v54 = vpop.permute.xlu1 %1878 }
0x25cf   :  { %v1883_v22 = vmul.f32 %v1879_v54, %v1871_v31 }
0x25d1   :  { %1888 = vrot.lane.b32.xlu1 %v1883_v22, %s2397_s3 }
0x2640   :  { %v1887_v37 = vpop.permute.xlu0 %1886 }
0x2641   :  { %v1892_v38 = vadd.f32 %v1887_v37, %v1872_v7 }
0x2643   :  { %2323 = vtanh.f32 %v1892_v38  ;;  %v1889_v63 = vpop.permute.xlu1 %1888 }
0x2644   :  { %v1893_v33 = vadd.f32 %v1889_v63, %v1873_v24 }
0x2646   :  { %2325 = vtanh.f32 %v1893_v33 }
0x264d   :  { %v2324_v34 = vpop.eup %2323 }
0x264e   :  { %1898 = vrot.lane.b32.xlu0 %v2324_v34, %s2396_s0 }
0x2650   :  { %v2326_v39 = vpop.eup %2325 }
0x2651   :  { %1900 = vrot.lane.b32.xlu1 %v2326_v39, %s2396_s0 }
0x26c0   :  { %v1899_v58 = vpop.permute.xlu0 %1898 }
0x26c1   :  { %v1904_v42 = vmul.f32 %v1899_v58, %v1870_v55 }
0x26c3   :  { %v1901_v41 = vpop.permute.xlu1 %1900 }
0x26c4   :  { %v1905_v36 = vmul.f32 %v1901_v41, %v1871_v31 }
0x26c6   :  { %v1906_v43 = vpack.c.bf16 %v1905_v36, %v1904_v42 }
0x26c8   :  { %1908 = vrot.lane.b32.xlu0 %v1906_v43, %s2397_s3 }
0x273a   :  { %v1909_v20 = vpop.permute.xlu0 %1908 }
0x273b   :  { %2162 = vmatmul.mubr.msk.bf16.vlgmr.msra.gmra.mrb[48].mxu1 %vm210_vm4, %v1909_v20 }
0x273c   :  { %2008 = vmatpush1.bf16.msra.mxu1 %v2769_v21  ;;  %2039 = vmatprep.mubr.bf16.mxu1 %v2394_v0 }
0x273d   :  { %2009 = vmatprep.subr.bf16.mxu1 %v2775_v19 }
0x2740   :  { %2010 = vmatpush1.bf16.msra.mxu1 %v2784_v51 }
0x280e   :  { %v1947_v44 = vpop.f32.mrb[48].mxu1 }
0x280f   :  { %v1956_v14 = vadd.f32 %v1947_v44, %v2862_v46  ;;  %v1949_v49 = vpop.f32.mrb[49].mxu1 }
0x2810   :  { %v1950_v8 = vpop.f32.mrb[50].mxu1 }
0x2811   :  { %v1958_v4 = vmul.f32 %v1956_v14, %v2536_v35  ;;  %v1951_v9 = vpop.f32.mrb[51].mxu1 }
0x2812   :  { %v1957_v57 = vadd.f32 %v1951_v9, %v2842_v15 }
0x2813   :  { %2327 = vtanh.f32 %v1958_v4 }
0x2814   :  { %v1959_v40 = vmul.f32 %v1957_v57, %v2536_v35 }
0x2816   :  { %2329 = vtanh.f32 %v1959_v40 }
0x281d   :  { %v2328_v21 = vpop.eup %2327 }
0x281e   :  { %1970 = vrot.lane.b32.xlu1 %v2328_v21, %s2396_s0  ;;  %v1962_v19 = vadd.f32 1.0, %v2328_v21 }
0x2820   :  { %v2330_v0 = vpop.eup %2329  ;;  %v1964_v46 = vmul.f32 0.5, %v1962_v19 }
0x2821   :  { %1972 = vrot.lane.b32.xlu0 %v2330_v0, %s2396_s0  ;;  %v1963_v51 = vadd.f32 1.0, %v2330_v0 }
0x2822   :  { %v1966_v32 = vmul.f32 %v1964_v46, %v1892_v38 }
0x2823   :  { %v1965_v60 = vmul.f32 0.5, %v1963_v51 }
0x2825   :  { %v1967_v10 = vmul.f32 %v1965_v60, %v1893_v33 }
0x2890   :  { %v1971_v47 = vpop.permute.xlu1 %1970 }
0x2891   :  { %v1976_v56 = vmul.f32 %v1971_v47, %v1964_v46 }
0x2893   :  { %1980 = vrot.lane.b32.xlu1 %v1976_v56, %s2397_s3  ;;  %v1973_v62 = vpop.permute.xlu0 %1972 }
0x2894   :  { %v1977_v15 = vmul.f32 %v1973_v62, %v1965_v60 }
0x2896   :  { %1982 = vrot.lane.b32.xlu0 %v1977_v15, %s2397_s3 }
0x2905   :  { %v1981_v1 = vpop.permute.xlu1 %1980 }
0x2906   :  { %v1986_v6 = vadd.f32 %v1981_v1, %v1966_v32 }
0x2908   :  { %2331 = vtanh.f32 %v1986_v6  ;;  %v1983_v11 = vpop.permute.xlu0 %1982 }
0x2909   :  { %v1987_v12 = vadd.f32 %v1983_v11, %v1967_v10 }
0x290b   :  { %2333 = vtanh.f32 %v1987_v12 }
0x2912   :  { %v2332_v13 = vpop.eup %2331 }
0x2913   :  { %1992 = vrot.lane.b32.xlu1 %v2332_v13, %s2396_s0 }
0x2915   :  { %v2334_v52 = vpop.eup %2333 }
0x2916   :  { %1994 = vrot.lane.b32.xlu0 %v2334_v52, %s2396_s0 }
0x2985   :  { %v1993_v16 = vpop.permute.xlu1 %1992 }
0x2986   :  { %v1998_v17 = vmul.f32 %v1993_v16, %v1964_v46 }
0x2988   :  { %v1995_v3 = vpop.permute.xlu0 %1994 }
0x2989   :  { %v1999_v45 = vmul.f32 %v1995_v3, %v1965_v60 }
0x298b   :  { %v2000_v50 = vpack.c.bf16 %v1999_v45, %v1998_v17 }
0x298d   :  { %2002 = vrot.lane.b32.xlu1 %v2000_v50, %s2397_s3 }
0x29ff   :  { %v2003_v18 = vpop.permute.xlu1 %2002 }
0x2a00   :  { %2163 = vmatmul.mubr.msk.bf16.vlgmr.msra.gmra.mrb[52].mxu1 %vm210_vm4, %v2003_v18 }
0x2ad3   :  { %v2041_v29 = vpop.f32.mrb[52].mxu1 }
0x2ad4   :  { %v2050_v23 = vadd.f32 %v2041_v29, %v2864_v5  ;;  %v2043_v53 = vpop.f32.mrb[53].mxu1 }
0x2ad5   :  { %v2044_v25 = vpop.f32.mrb[54].mxu1 }
0x2ad6   :  { %v2052_v26 = vmul.f32 %v2050_v23, %v2536_v35  ;;  %v2045_v2 = vpop.f32.mrb[55].mxu1 }
0x2ad7   :  { %v2051_v27 = vadd.f32 %v2045_v2, %v2838_v61 }
0x2ad8   :  { %2335 = vtanh.f32 %v2052_v26 }
0x2ad9   :  { %v2053_v59 = vmul.f32 %v2051_v27, %v2536_v35 }
0x2adb   :  { %2337 = vtanh.f32 %v2053_v59 }
0x2ae2   :  { %v2336_v48 = vpop.eup %2335 }
0x2ae3   :  { %2064 = vrot.lane.b32.xlu0 %v2336_v48, %s2396_s0  ;;  %v2056_v28 = vadd.f32 1.0, %v2336_v48 }
0x2ae5   :  { %v2338_v55 = vpop.eup %2337  ;;  %v2058_v5 = vmul.f32 0.5, %v2056_v28 }
0x2ae6   :  { %2066 = vrot.lane.b32.xlu1 %v2338_v55, %s2396_s0  ;;  %v2057_v30 = vadd.f32 1.0, %v2338_v55 }
0x2ae7   :  { %v2060_v35 = vmul.f32 %v2058_v5, %v1986_v6 }
0x2ae8   :  { %v2059_v22 = vmul.f32 0.5, %v2057_v30 }
0x2aea   :  { %v2061_v24 = vmul.f32 %v2059_v22, %v1987_v12 }
0x2b55   :  { %v2065_v31 = vpop.permute.xlu0 %2064 }
0x2b56   :  { %v2070_v54 = vmul.f32 %v2065_v31, %v2058_v5 }
0x2b58   :  { %2074 = vrot.lane.b32.xlu0 %v2070_v54, %s2397_s3  ;;  %v2067_v7 = vpop.permute.xlu1 %2066 }
0x2b59   :  { %v2071_v61 = vmul.f32 %v2067_v7, %v2059_v22 }
0x2b5b   :  { %2076 = vrot.lane.b32.xlu1 %v2071_v61, %s2397_s3 }
0x2bca   :  { %v2075_v37 = vpop.permute.xlu0 %2074 }
0x2bcb   :  { %v2080_v38 = vadd.f32 %v2075_v37, %v2060_v35 }
0x2bcd   :  { %2339 = vtanh.f32 %v2080_v38  ;;  %v2077_v63 = vpop.permute.xlu1 %2076 }
0x2bce   :  { %v2081_v33 = vadd.f32 %v2077_v63, %v2061_v24 }
0x2bd0   :  { %2341 = vtanh.f32 %v2081_v33 }
0x2bd7   :  { %v2340_v34 = vpop.eup %2339 }
0x2bd8   :  { %2086 = vrot.lane.b32.xlu0 %v2340_v34, %s2396_s0 }
0x2bda   :  { %v2342_v39 = vpop.eup %2341 }
0x2bdb   :  { %2088 = vrot.lane.b32.xlu1 %v2342_v39, %s2396_s0 }
0x2c4a   :  { %v2087_v58 = vpop.permute.xlu0 %2086 }
0x2c4b   :  { %v2092_v41 = vmul.f32 %v2087_v58, %v2058_v5 }
0x2c4d   :  { %2095 = vrot.lane.b32.xlu0 %v2092_v41, %s2397_s3  ;;  %v2089_v42 = vpop.permute.xlu1 %2088 }
0x2c4e   :  { %v2093_v36 = vmul.f32 %v2089_v42, %v2059_v22 }
0x2c50   :  { %2100 = vrot.lane.b32.xlu1 %v2093_v36, %s2396_s0 }
0x2cbf   :  { %v2096_v43 = vpop.permute.xlu0 %2095 }
0x2cc0   :  { %2098 = vst.msk [vmem:[#allocation8] sm:$0xff] %vm210_vm4, %v2096_v43 }
0x2cc2   :  { %v2101_v20 = vpop.permute.xlu1 %2100 }
0x2cc3   :  { %2104 = vst.msk [vmem:[#allocation8] sm:$0xff] %vm2103_vm5, %v2101_v20 }
0x2cc4   :  { %2376 = shalt.err (!%p2373_p12)
}
0x2cc5   :  { %s2377_s0 = scalar_lea.hbm %s3006_s7, 128 }
0x2cc6   :  { %p2378_p13 = scmp.ne.s32.totalorder %s3006_s7, %s2377_s0  ;;  %p2381_p0 = scmp.lt.u32.totalorder %s2377_s0, %s3006_s7 }
0x2cc8   :  { %p2383_p1 = pnand %p2381_p0, %p2378_p13 }
0x2cca   :  { %2386 = shalt.err (!%p2383_p1)
}
0x2ccb   :  { %2114 = dma.vmem_to_hbm [thread:$0]  %s2112_s15, 128, %s3006_s7, [#allocation7]  }
0x2ccc   :  { %2389 = dma.done.wait [#allocation7], 128  }
0x2ccd   :  { %2390 = vsyncadd [#allocation7], 4294967168 }
0x2cce   :  { %2118 = vsyncpa [#allocation6], 1 }
0x2ccf   :  { %2119 = vsyncpa [#allocation7], 1 }

</bundles_post_ra>
